<compile_context>
chip_gen: v5e
topology: v5e:2x2
jax: 0.10.0
libtpu: 0.0.40
codegen_flags: <defaults>
</compile_context>

<pallas_src>
import jax
import jax.numpy as jnp
from jax.experimental import pallas as pl
from jax.experimental.pallas import tpu as pltpu

EPS = 1e-5
LANE = 128
SUBLANE = 8


def _round_up(x, m):
    return (x + m - 1) // m * m


def _pick_vmem_limit():
    # v5e/v6e: 128 MiB physical VMEM -> 96 MiB scoped; v7x: 64 MiB per core -> 40 MiB scoped.
    try:
        cap = int(getattr(pltpu.get_tpu_info(), "vmem_capacity_bytes", 0))
    except Exception:
        cap = 0
    if cap >= 100 * 1024 * 1024:
        return 96 * 1024 * 1024
    if cap > 0:
        return 40 * 1024 * 1024
    return 48 * 1024 * 1024  # unknown chip: previously validated value


VMEM_LIMIT = _pick_vmem_limit()


# ---------------------------------------------------------------------------
# Kernels
# ---------------------------------------------------------------------------
def _fused_conv3x3_kernel(x_ref, w_ref, y_ref, psum_ref, psq_ref):
    """Fused 3x3 stride-1 pad-1 conv for one batch element + per-image BN partial sums.

    x_ref : (1, H+2, W+2, Cin)  bf16, spatially pre-padded image
    w_ref : (9*Cin, Cp)         bf16, rows ordered (ky, kx, cin)
    y_ref : (1, H*W, Cp)        bf16
    psum_ref / psq_ref : (1, 1, Cp) f32
    """
    _, hp, wp, cin = x_ref.shape
    ho, wo = hp - 2, wp - 2
    cp = y_ref.shape[-1]
    acc = jnp.zeros((ho * wo, cp), jnp.float32)
    for ky in range(3):                      # static 9-tap loop, unrolled at trace time
        for kx in range(3):
            tap = ky * 3 + kx
            # shifted window load (offsets are static); wo is a sublane multiple so the
            # (ho, wo, cin) -> (ho*wo, cin) collapse is layout-preserving.
            a = x_ref[0, pl.ds(ky, ho), pl.ds(kx, wo), :].reshape(ho * wo, cin)
            wslc = w_ref[pl.ds(tap * cin, cin), :]
            acc = acc + jnp.dot(a, wslc, preferred_element_type=jnp.float32)
    y_ref[...] = acc.astype(y_ref.dtype).reshape(1, ho * wo, cp)
    psum_ref[...] = jnp.sum(acc, axis=0, keepdims=True).reshape(1, 1, cp)
    psq_ref[...] = jnp.sum(acc * acc, axis=0, keepdims=True).reshape(1, 1, cp)


def _gemm_stats_kernel(a_ref, w_ref, y_ref, psum_ref, psq_ref):
    """One M-tile of an im2col GEMM (bf16 x bf16 -> f32 acc -> bf16 store) + BN partial sums."""
    acc = jnp.dot(a_ref[...], w_ref[...], preferred_element_type=jnp.float32)
    y_ref[...] = acc.astype(y_ref.dtype)
    cp = acc.shape[-1]
    psum_ref[...] = jnp.sum(acc, axis=0, keepdims=True).reshape(1, 1, cp)
    psq_ref[...] = jnp.sum(acc * acc, axis=0, keepdims=True).reshape(1, 1, cp)


def _bn_relu_kernel(y_ref, scale_ref, shift_ref, out_ref):
    out = y_ref[...].astype(jnp.float32) * scale_ref[...] + shift_ref[...]
    out_ref[...] = jnp.maximum(out, 0.0).astype(out_ref.dtype)


def _bn_add_relu_identity_kernel(y2_ref, sc_ref, scale_ref, shift_ref, out_ref):
    out = (y2_ref[...].astype(jnp.float32) * scale_ref[...] + shift_ref[...]
           + sc_ref[...].astype(jnp.float32))
    out_ref[...] = jnp.maximum(out, 0.0).astype(out_ref.dtype)


def _bn_add_relu_proj_kernel(y2_ref, ysc_ref, s2_ref, t2_ref, ss_ref, ts_ref, out_ref):
    out = (y2_ref[...].astype(jnp.float32) * s2_ref[...] + t2_ref[...]
           + ysc_ref[...].astype(jnp.float32) * ss_ref[...] + ts_ref[...])
    out_ref[...] = jnp.maximum(out, 0.0).astype(out_ref.dtype)


# ---------------------------------------------------------------------------
# Tiled pallas_call wrappers
# ---------------------------------------------------------------------------
def _fused_conv3x3(xpad, w9):
    """xpad: (N, H+2, W+2, Cin) bf16; w9: (9*Cin, Cp) bf16.
    Returns y (N, H*W, Cp) bf16, col_sum (Cp,) f32, col_sumsq (Cp,) f32."""
    n, hp, wp, cin = xpad.shape
    ho, wo = hp - 2, wp - 2
    cp = w9.shape[1]
    y, psum, psq = pl.pallas_call(
        _fused_conv3x3_kernel,
        out_shape=(
            jax.ShapeDtypeStruct((n, ho * wo, cp), jnp.bfloat16),
            jax.ShapeDtypeStruct((n, 1, cp), jnp.float32),
            jax.ShapeDtypeStruct((n, 1, cp), jnp.float32),
        ),
        grid=(n,),
        in_specs=[
            pl.BlockSpec((1, hp, wp, cin), lambda b: (b, 0, 0, 0)),
            pl.BlockSpec((w9.shape[0], cp), lambda b: (0, 0)),      # weights pinned
        ],
        out_specs=(
            pl.BlockSpec((1, ho * wo, cp), lambda b: (b, 0, 0)),
            pl.BlockSpec((1, 1, cp), lambda b: (b, 0, 0)),
            pl.BlockSpec((1, 1, cp), lambda b: (b, 0, 0)),
        ),
        compiler_params=pltpu.CompilerParams(
            dimension_semantics=("parallel",),
            vmem_limit_bytes=VMEM_LIMIT,
        ),
    )(xpad, w9)
    return y, psum[:, 0, :].sum(axis=0), psq[:, 0, :].sum(axis=0)


def _gemm_with_stats(a, w, tm):
    """a: (Mp, K) bf16, w: (K, Cp) bf16 -> y (Mp, Cp) bf16, col_sum (Cp,), col_sumsq (Cp,)."""
    mp, k = a.shape
    cp = w.shape[1]
    gm = mp // tm
    y, psum, psq = pl.pallas_call(
        _gemm_stats_kernel,
        out_shape=(
            jax.ShapeDtypeStruct((mp, cp), jnp.bfloat16),
            jax.ShapeDtypeStruct((gm, 1, cp), jnp.float32),
            jax.ShapeDtypeStruct((gm, 1, cp), jnp.float32),
        ),
        grid=(gm,),
        in_specs=[
            pl.BlockSpec((tm, k), lambda i: (i, 0)),
            pl.BlockSpec((k, cp), lambda i: (0, 0)),                # weights pinned
        ],
        out_specs=(
            pl.BlockSpec((tm, cp), lambda i: (i, 0)),
            pl.BlockSpec((1, 1, cp), lambda i: (i, 0, 0)),
            pl.BlockSpec((1, 1, cp), lambda i: (i, 0, 0)),
        ),
        compiler_params=pltpu.CompilerParams(
            dimension_semantics=("parallel",),
            vmem_limit_bytes=VMEM_LIMIT,
        ),
    )(a, w)
    return y, psum[:, 0, :].sum(axis=0), psq[:, 0, :].sum(axis=0)


def _apply3d(kernel, rows, vecs, out_dtype):
    """Tiled elementwise epilogue over batch: rows are (N, S, Cp), vecs are (1, Cp) per-channel."""
    n, s, cp = rows[0].shape
    row_spec = pl.BlockSpec((1, s, cp), lambda b: (b, 0, 0))
    vec_spec = pl.BlockSpec((1, 1, cp), lambda b: (0, 0, 0))
    return pl.pallas_call(
        kernel,
        out_shape=jax.ShapeDtypeStruct((n, s, cp), out_dtype),
        grid=(n,),
        in_specs=[row_spec] * len(rows) + [vec_spec] * len(vecs),
        out_specs=row_spec,
        compiler_params=pltpu.CompilerParams(
            dimension_semantics=("parallel",),
            vmem_limit_bytes=VMEM_LIMIT,
        ),
    )(*rows, *[v.reshape(1, 1, cp) for v in vecs])


def _bn_scale_shift(col_sum, col_sumsq, count, gamma_p, beta_p):
    """Per-channel BN(batch stats) folded into scale/shift (tiny, plain JAX)."""
    mean = col_sum / count
    var = jnp.maximum(col_sumsq / count - mean * mean, 0.0)
    scale = gamma_p * jax.lax.rsqrt(var + EPS)
    shift = beta_p - mean * scale
    return scale.reshape(1, -1), shift.reshape(1, -1)


# ---------------------------------------------------------------------------
# Glue (plain JAX, data movement only)
# ---------------------------------------------------------------------------
def _im2col_3x3(x_nhwc, stride):
    """3x3, pad=1 patches. Returns (N*Ho*Wo, 9*C) with (ky, kx, c) feature ordering."""
    n, h, w, c = x_nhwc.shape
    ho = (h - 1) // stride + 1
    wo = (w - 1) // stride + 1
    xp = jnp.pad(x_nhwc, ((0, 0), (1, 1), (1, 1), (0, 0)))
    cols = []
    for ky in range(3):
        for kx in range(3):
            sl = xp[:, ky:ky + stride * (ho - 1) + 1:stride,
                    kx:kx + stride * (wo - 1) + 1:stride, :]
            cols.append(sl)
    patches = jnp.concatenate(cols, axis=-1)          # (N, Ho, Wo, 9*C)
    return patches.reshape(n * ho * wo, 9 * c), ho, wo


def _conv3x3(x_img, w_hwio, stride, cp, block_rows, compute_dtype):
    """3x3 pad-1 conv. x_img: (N,H,W,Cin), w_hwio: (3,3,Cin,Cout).
    Returns y (N, Ho*Wo, Cp) bf16, col_sum (Cp,), col_sumsq (Cp,)."""
    n, h, w, cin = x_img.shape
    cout = w_hwio.shape[-1]
    ho = (h - 1) // stride + 1
    wo = (w - 1) // stride + 1
    m = n * ho * wo
    wmat = jnp.pad(w_hwio, ((0, 0), (0, 0), (0, 0), (0, cp - cout))) \
              .reshape(9 * cin, cp).astype(compute_dtype)

    if stride == 1 and wo % SUBLANE == 0:
        # fused path: no im2col materialization, one batch element per grid step
        xpad = jnp.pad(x_img.astype(compute_dtype), ((0, 0), (1, 1), (1, 1), (0, 0)))
        return _fused_conv3x3(xpad, wmat)

    # fallback: im2col GEMM (stride-2 conv1 of downsampling blocks)
    patches, _, _ = _im2col_3x3(x_img.astype(compute_dtype), stride)
    k = patches.shape[1]
    kp = _round_up(k, LANE) if k > LANE else k        # lane-align K when it spans >1 lane tile
    tm = min(block_rows, _round_up(m, SUBLANE))
    mp = _round_up(m, tm)
    patches = jnp.pad(patches, ((0, mp - m), (0, kp - k)))
    wmat = jnp.pad(wmat, ((0, kp - k), (0, 0)))
    y, s, q = _gemm_with_stats(patches, wmat, tm)
    return y[:m].reshape(n, ho * wo, cp), s, q


def _proj_shortcut(x_img, ws, stride, cp, block_rows, compute_dtype):
    """1x1 stride-s projection shortcut as a tiled GEMM."""
    n, h, w, cin = x_img.shape
    ho = (h - 1) // stride + 1
    wo = (w - 1) // stride + 1
    m = n * ho * wo
    xs = x_img[:, ::stride, ::stride, :].reshape(m, cin).astype(compute_dtype)
    tm = min(block_rows, _round_up(m, SUBLANE))
    mp = _round_up(m, tm)
    xs = jnp.pad(xs, ((0, mp - m), (0, 0)))
    wsm = jnp.pad(ws, ((0, 0), (0, cp - ws.shape[1]))).astype(compute_dtype)
    y, s, q = _gemm_with_stats(xs, wsm, tm)
    return y[:m].reshape(n, ho * wo, cp), s, q


# ---------------------------------------------------------------------------
# BasicBlock forward (Pallas)
# ---------------------------------------------------------------------------
def basic_block_forward(x_nchw, params, stride, block_rows=512,
                        compute_dtype=jnp.bfloat16):
    n, cin, h, w = x_nchw.shape
    planes = params["w1"].shape[-1]
    identity = (stride == 1 and cin == planes)
    cp = _round_up(planes, LANE)                      # lane-dense output channels (no over-pad)
    ho = (h - 1) // stride + 1
    wo = (w - 1) // stride + 1
    m = n * ho * wo

    x = jnp.transpose(x_nchw, (0, 2, 3, 1)).astype(jnp.float32)   # NHWC

    def pad_vec(v):
        # zero-pad gamma/beta so padded channels produce exactly 0 after BN-apply
        return jnp.pad(v.astype(jnp.float32), (0, cp - v.shape[0]))

    # --- conv1 -> BN1(batch stats) -> ReLU -----------------------------------
    y1, s1, q1 = _conv3x3(x, params["w1"], stride, cp, block_rows, compute_dtype)
    scale1, shift1 = _bn_scale_shift(s1, q1, m, pad_vec(params["g1"]), pad_vec(params["b1"]))
    h1 = _apply3d(_bn_relu_kernel, (y1,), (scale1, shift1), compute_dtype)   # (N, Ho*Wo, Cp) bf16

    # --- conv2 (always stride 1, fused 9-tap) --------------------------------
    h1_img = h1.reshape(n, ho, wo, cp)
    w2p = jnp.pad(params["w2"], ((0, 0), (0, 0), (0, cp - planes), (0, 0)))  # pad in-channels
    y2, s2, q2 = _conv3x3(h1_img, w2p, 1, cp, block_rows, compute_dtype)
    scale2, shift2 = _bn_scale_shift(s2, q2, m, pad_vec(params["g2"]), pad_vec(params["b2"]))

    # --- shortcut + BN2-apply + residual add + ReLU --------------------------
    if identity:
        sc = jnp.pad(x, ((0, 0), (0, 0), (0, 0), (0, cp - cin))) \
                .reshape(n, ho * wo, cp).astype(compute_dtype)               # bf16 residual stream
        out = _apply3d(_bn_add_relu_identity_kernel, (y2, sc),
                       (scale2, shift2), jnp.float32)
    else:
        ysc, ss, qs = _proj_shortcut(x, params["ws"], stride, cp, block_rows, compute_dtype)
        scale_s, shift_s = _bn_scale_shift(ss, qs, m,
                                           pad_vec(params["gs"]), pad_vec(params["bs"]))
        out = _apply3d(_bn_add_relu_proj_kernel, (y2, ysc),
                       (scale2, shift2, scale_s, shift_s), jnp.float32)

    out = out[:, :, :planes].reshape(n, ho, wo, planes)
    return out.transpose(0, 3, 1, 2)                  # back to NCHW


# ---------------------------------------------------------------------------
# Pure-JAX reference (validation only)
# ---------------------------------------------------------------------------
def _bn_ref(y_nhwc, gamma, beta):
    mean = jnp.mean(y_nhwc, axis=(0, 1, 2), keepdims=True)
    var = jnp.mean((y_nhwc - mean) ** 2, axis=(0, 1, 2), keepdims=True)
    return (y_nhwc - mean) * jax.lax.rsqrt(var + EPS) * gamma + beta


def _conv3_ref(x_nhwc, w_hwio, stride):
    return jax.lax.conv_general_dilated(
        x_nhwc, w_hwio, window_strides=(stride, stride),
        padding=((1, 1), (1, 1)), dimension_numbers=("NHWC", "HWIO", "NHWC"))


def basic_block_ref(x_nchw, params, stride):
    x = jnp.transpose(x_nchw, (0, 2, 3, 1)).astype(jnp.float32)
    cin = x.shape[-1]
    planes = params["w1"].shape[-1]
    h1 = jax.nn.relu(_bn_ref(_conv3_ref(x, params["w1"], stride), params["g1"], params["b1"]))
    y2 = _bn_ref(_conv3_ref(h1, params["w2"], 1), params["g2"], params["b2"])
    if stride == 1 and cin == planes:
        sc = x
    else:
        sc = jax.lax.conv_general_dilated(
            x, params["ws"][None, None], window_strides=(stride, stride),
            padding="VALID", dimension_numbers=("NHWC", "HWIO", "NHWC"))
        sc = _bn_ref(sc, params["gs"], params["bs"])
    return jax.nn.relu(y2 + sc).transpose(0, 3, 1, 2)


# ---------------------------------------------------------------------------
# Deterministic parameter init + demo
# ---------------------------------------------------------------------------
def make_params(key, in_planes, planes):
    ks = jax.random.split(key, 9)
    return dict(
        w1=0.2 * jax.random.normal(ks[0], (3, 3, in_planes, planes), jnp.float32),
        g1=1.0 + 0.1 * jax.random.normal(ks[1], (planes,), jnp.float32),
        b1=0.1 * jax.random.normal(ks[2], (planes,), jnp.float32),
        w2=0.2 * jax.random.normal(ks[3], (3, 3, planes, planes), jnp.float32),
        g2=1.0 + 0.1 * jax.random.normal(ks[4], (planes,), jnp.float32),
        b2=0.1 * jax.random.normal(ks[5], (planes,), jnp.float32),
        ws=0.2 * jax.random.normal(ks[6], (in_planes, planes), jnp.float32),
        gs=1.0 + 0.1 * jax.random.normal(ks[7], (planes,), jnp.float32),
        bs=0.1 * jax.random.normal(ks[8], (planes,), jnp.float32),
    )


if __name__ == "__main__":
    key = jax.random.PRNGKey(0)
    k_x1, k_p1, k_x2, k_p2 = jax.random.split(key, 4)

    fwd = jax.jit(basic_block_forward, static_argnums=(2,))
    TOL = 0.15   # bf16 GEMM operands / bf16 intermediates with f32 accumulation; values O(1)

    # Case 1: downsampling block (stride=2, in_planes != planes -> 1x1-conv projection shortcut)
    n, cin, hgt, wid = 2, 4, 16, 16
    planes, stride = 8, 2
    x1 = jax.random.normal(k_x1, (n, cin, hgt, wid), jnp.float32)
    p1 = make_params(k_p1, cin, planes)
    out1 = jax.block_until_ready(fwd(x1, p1, stride))
    ref1 = basic_block_ref(x1, p1, stride)
    assert out1.shape == (n, planes, hgt // stride, wid // stride)
    err1 = float(jnp.max(jnp.abs(out1 - ref1)))
    if err1 > TOL:
        raise AssertionError(f"stride-2 block mismatch vs reference: max abs err {err1}")

    # Case 2: identity-shortcut block (stride=1, in_planes == planes); both convs take the fused path
    x2 = jax.random.normal(k_x2, (n, planes, hgt, wid), jnp.float32)
    p2 = make_params(k_p2, planes, planes)
    out2 = jax.block_until_ready(fwd(x2, p2, 1))
    ref2 = basic_block_ref(x2, p2, 1)
    assert out2.shape == (n, planes, hgt, wid)
    err2 = float(jnp.max(jnp.abs(out2 - ref2)))
    if err2 > TOL:
        raise AssertionError(f"identity block mismatch vs reference: max abs err {err2}")

    print("KERNEL_OK")
</pallas_src>

<mosaic_0001>
module attributes {stable_mosaic.version = 11 : i64} {
  func.func @_gemm_stats_kernel(%arg0: i32, %arg1: memref<128x36xbf16, #tpu.memory_space<vmem>>, %arg2: memref<36x128xbf16, #tpu.memory_space<vmem>>, %arg3: memref<128x128xbf16, #tpu.memory_space<vmem>>, %arg4: memref<1x1x128xf32, #tpu.memory_space<vmem>>, %arg5: memref<1x1x128xf32, #tpu.memory_space<vmem>>) attributes {dimension_semantics = [#tpu.dimension_semantics<parallel>], iteration_bounds = array<i64: 1>, scalar_prefetch = 0 : i64, scratch_operands = 0 : i64, tpu.core_type = #tpu.core_type<tc>, window_params = [{transform_indices = @transform_0, window_bounds = array<i64: 128, 36>}, {pipeline_mode = #tpu.pipeline_mode<synchronous>, transform_indices = @transform_1, window_bounds = array<i64: 36, 128>}, {transform_indices = @transform_2, window_bounds = array<i64: 128, 128>}, {transform_indices = @transform_3, window_bounds = array<i64: 1, 1, 128>}, {transform_indices = @transform_4, window_bounds = array<i64: 1, 1, 128>}]} {
    %c0 = arith.constant 0 : index
    %c0_0 = arith.constant 0 : index
    %0 = vector.load %arg1[%c0, %c0_0] : memref<128x36xbf16, #tpu.memory_space<vmem>>, vector<128x36xbf16>
    %c0_1 = arith.constant 0 : index
    %c0_2 = arith.constant 0 : index
    %1 = vector.load %arg2[%c0_1, %c0_2] : memref<36x128xbf16, #tpu.memory_space<vmem>>, vector<36x128xbf16>
    %cst = arith.constant dense<0.000000e+00> : vector<128x128xf32>
    %2 = tpu.matmul %0, %1, %cst {dimension_numbers = #tpu.dot_dimension_numbers<[1], [0], [0], [1], [0, 0, 1, 1], [], []>} : vector<128x36xbf16>, vector<36x128xbf16>, vector<128x128xf32> -> vector<128x128xf32>
    %3 = arith.truncf %2 : vector<128x128xf32> to vector<128x128xbf16>
    %c0_3 = arith.constant 0 : index
    %c0_4 = arith.constant 0 : index
    %4 = vector.load %arg3[%c0_3, %c0_4] : memref<128x128xbf16, #tpu.memory_space<vmem>>, vector<128x128xbf16>
    tpu.vector_store %arg3[%c0_3, %c0_4], %3 {strides = array<i32>} : memref<128x128xbf16, #tpu.memory_space<vmem>>, vector<128x128xbf16>,
    %cst_5 = arith.constant dense<0.000000e+00> : vector<128xf32>
    %5 = vector.multi_reduction <add>, %2, %cst_5 [0] : vector<128x128xf32> to vector<128xf32>
    %6 = vector.shape_cast %5 : vector<128xf32> to vector<1x128xf32>
    %7 = vector.shape_cast %6 : vector<1x128xf32> to vector<1x1x128xf32>
    %c0_6 = arith.constant 0 : index
    %c0_7 = arith.constant 0 : index
    %c0_8 = arith.constant 0 : index
    %8 = vector.load %arg4[%c0_6, %c0_7, %c0_8] : memref<1x1x128xf32, #tpu.memory_space<vmem>>, vector<1x1x128xf32>
    tpu.vector_store %arg4[%c0_6, %c0_7, %c0_8], %7 {strides = array<i32>} : memref<1x1x128xf32, #tpu.memory_space<vmem>>, vector<1x1x128xf32>,
    %9 = arith.mulf %2, %2 : vector<128x128xf32>
    %cst_9 = arith.constant dense<0.000000e+00> : vector<128xf32>
    %10 = vector.multi_reduction <add>, %9, %cst_9 [0] : vector<128x128xf32> to vector<128xf32>
    %11 = vector.shape_cast %10 : vector<128xf32> to vector<1x128xf32>
    %12 = vector.shape_cast %11 : vector<1x128xf32> to vector<1x1x128xf32>
    %c0_10 = arith.constant 0 : index
    %c0_11 = arith.constant 0 : index
    %c0_12 = arith.constant 0 : index
    %13 = vector.load %arg5[%c0_10, %c0_11, %c0_12] : memref<1x1x128xf32, #tpu.memory_space<vmem>>, vector<1x1x128xf32>
    tpu.vector_store %arg5[%c0_10, %c0_11, %c0_12], %12 {strides = array<i32>} : memref<1x1x128xf32, #tpu.memory_space<vmem>>, vector<1x1x128xf32>,
    return
  }
  func.func @transform_0(%arg0: i32) -> (i32, i32) {
    %c0_i32 = arith.constant 0 : i32
    %c0_i32_0 = arith.constant 0 : i32
    return %arg0, %c0_i32 : i32, i32
  }
  func.func @transform_1(%arg0: i32) -> (i32, i32) {
    %c0_i32 = arith.constant 0 : i32
    %c0_i32_0 = arith.constant 0 : i32
    %c0_i32_1 = arith.constant 0 : i32
    return %c0_i32, %c0_i32_0 : i32, i32
  }
  func.func @transform_2(%arg0: i32) -> (i32, i32) {
    %c0_i32 = arith.constant 0 : i32
    %c0_i32_0 = arith.constant 0 : i32
    return %arg0, %c0_i32 : i32, i32
  }
  func.func @transform_3(%arg0: i32) -> (i32, i32, i32) {
    %c0_i32 = arith.constant 0 : i32
    %c0_i32_0 = arith.constant 0 : i32
    %c0_i32_1 = arith.constant 0 : i32
    return %arg0, %c0_i32, %c0_i32_0 : i32, i32, i32
  }
  func.func @transform_4(%arg0: i32) -> (i32, i32, i32) {
    %c0_i32 = arith.constant 0 : i32
    %c0_i32_0 = arith.constant 0 : i32
    %c0_i32_1 = arith.constant 0 : i32
    return %arg0, %c0_i32, %c0_i32_0 : i32, i32, i32
  }
}

module attributes {stable_mosaic.version = 11 : i64} {
  func.func @_bn_relu_kernel(%arg0: i32, %arg1: memref<1x64x128xbf16, #tpu.memory_space<vmem>>, %arg2: memref<1x1x128xf32, #tpu.memory_space<vmem>>, %arg3: memref<1x1x128xf32, #tpu.memory_space<vmem>>, %arg4: memref<1x64x128xbf16, #tpu.memory_space<vmem>>) attributes {dimension_semantics = [#tpu.dimension_semantics<parallel>], iteration_bounds = array<i64: 2>, scalar_prefetch = 0 : i64, scratch_operands = 0 : i64, tpu.core_type = #tpu.core_type<tc>, window_params = [{transform_indices = @transform_0, window_bounds = array<i64: 1, 64, 128>}, {pipeline_mode = #tpu.pipeline_mode<synchronous>, transform_indices = @transform_1, window_bounds = array<i64: 1, 1, 128>}, {pipeline_mode = #tpu.pipeline_mode<synchronous>, transform_indices = @transform_2, window_bounds = array<i64: 1, 1, 128>}, {transform_indices = @transform_3, window_bounds = array<i64: 1, 64, 128>}]} {
    %c0 = arith.constant 0 : index
    %c0_0 = arith.constant 0 : index
    %c0_1 = arith.constant 0 : index
    %0 = vector.load %arg1[%c0, %c0_0, %c0_1] : memref<1x64x128xbf16, #tpu.memory_space<vmem>>, vector<1x64x128xbf16>
    %1 = arith.extf %0 : vector<1x64x128xbf16> to vector<1x64x128xf32>
    %c0_2 = arith.constant 0 : index
    %c0_3 = arith.constant 0 : index
    %c0_4 = arith.constant 0 : index
    %2 = vector.load %arg2[%c0_2, %c0_3, %c0_4] : memref<1x1x128xf32, #tpu.memory_space<vmem>>, vector<1x1x128xf32>
    %3 = vector.broadcast %2 : vector<1x1x128xf32> to vector<1x64x128xf32>
    %4 = arith.mulf %1, %3 : vector<1x64x128xf32>
    %c0_5 = arith.constant 0 : index
    %c0_6 = arith.constant 0 : index
    %c0_7 = arith.constant 0 : index
    %5 = vector.load %arg3[%c0_5, %c0_6, %c0_7] : memref<1x1x128xf32, #tpu.memory_space<vmem>>, vector<1x1x128xf32>
    %6 = vector.broadcast %5 : vector<1x1x128xf32> to vector<1x64x128xf32>
    %7 = arith.addf %4, %6 : vector<1x64x128xf32>
    %cst = arith.constant 0.000000e+00 : f32
    %8 = vector.broadcast %cst : f32 to vector<1x64x128xf32>
    %9 = arith.maximumf %7, %8 : vector<1x64x128xf32>
    %10 = arith.truncf %9 : vector<1x64x128xf32> to vector<1x64x128xbf16>
    %c0_8 = arith.constant 0 : index
    %c0_9 = arith.constant 0 : index
    %c0_10 = arith.constant 0 : index
    %11 = vector.load %arg4[%c0_8, %c0_9, %c0_10] : memref<1x64x128xbf16, #tpu.memory_space<vmem>>, vector<1x64x128xbf16>
    tpu.vector_store %arg4[%c0_8, %c0_9, %c0_10], %10 {strides = array<i32>} : memref<1x64x128xbf16, #tpu.memory_space<vmem>>, vector<1x64x128xbf16>,
    return
  }
  func.func @transform_0(%arg0: i32) -> (i32, i32, i32) {
    %c0_i32 = arith.constant 0 : i32
    %c0_i32_0 = arith.constant 0 : i32
    %c0_i32_1 = arith.constant 0 : i32
    return %arg0, %c0_i32, %c0_i32_0 : i32, i32, i32
  }
  func.func @transform_1(%arg0: i32) -> (i32, i32, i32) {
    %c0_i32 = arith.constant 0 : i32
    %c0_i32_0 = arith.constant 0 : i32
    %c0_i32_1 = arith.constant 0 : i32
    %c0_i32_2 = arith.constant 0 : i32
    return %c0_i32, %c0_i32_0, %c0_i32_1 : i32, i32, i32
  }
  func.func @transform_2(%arg0: i32) -> (i32, i32, i32) {
    %c0_i32 = arith.constant 0 : i32
    %c0_i32_0 = arith.constant 0 : i32
    %c0_i32_1 = arith.constant 0 : i32
    %c0_i32_2 = arith.constant 0 : i32
    return %c0_i32, %c0_i32_0, %c0_i32_1 : i32, i32, i32
  }
  func.func @transform_3(%arg0: i32) -> (i32, i32, i32) {
    %c0_i32 = arith.constant 0 : i32
    %c0_i32_0 = arith.constant 0 : i32
    %c0_i32_1 = arith.constant 0 : i32
    return %arg0, %c0_i32, %c0_i32_0 : i32, i32, i32
  }
}

module attributes {stable_mosaic.version = 11 : i64} {
  func.func @_fused_conv3x3_kernel(%arg0: i32, %arg1: memref<1x10x10x128xbf16, #tpu.memory_space<vmem>>, %arg2: memref<1152x128xbf16, #tpu.memory_space<vmem>>, %arg3: memref<1x64x128xbf16, #tpu.memory_space<vmem>>, %arg4: memref<1x1x128xf32, #tpu.memory_space<vmem>>, %arg5: memref<1x1x128xf32, #tpu.memory_space<vmem>>) attributes {dimension_semantics = [#tpu.dimension_semantics<parallel>], iteration_bounds = array<i64: 2>, scalar_prefetch = 0 : i64, scratch_operands = 0 : i64, tpu.core_type = #tpu.core_type<tc>, window_params = [{transform_indices = @transform_0, window_bounds = array<i64: 1, 10, 10, 128>}, {pipeline_mode = #tpu.pipeline_mode<synchronous>, transform_indices = @transform_1, window_bounds = array<i64: 1152, 128>}, {transform_indices = @transform_2, window_bounds = array<i64: 1, 64, 128>}, {transform_indices = @transform_3, window_bounds = array<i64: 1, 1, 128>}, {transform_indices = @transform_4, window_bounds = array<i64: 1, 1, 128>}]} {
    %cst = arith.constant 0.000000e+00 : f32
    %0 = vector.broadcast %cst : f32 to vector<64x128xf32>
    %c0 = arith.constant 0 : index
    %c0_0 = arith.constant 0 : index
    %c0_1 = arith.constant 0 : index
    %c0_2 = arith.constant 0 : index
    %1 = vector.load %arg1[%c0, %c0_0, %c0_1, %c0_2] : memref<1x10x10x128xbf16, #tpu.memory_space<vmem>>, vector<1x8x8x128xbf16>
    %2 = vector.shape_cast %1 : vector<1x8x8x128xbf16> to vector<8x8x128xbf16>
    %3 = vector.shape_cast %2 : vector<8x8x128xbf16> to vector<64x128xbf16>
    %c0_3 = arith.constant 0 : index
    %c0_4 = arith.constant 0 : index
    %4 = vector.load %arg2[%c0_3, %c0_4] : memref<1152x128xbf16, #tpu.memory_space<vmem>>, vector<128x128xbf16>
    %cst_5 = arith.constant dense<0.000000e+00> : vector<64x128xf32>
    %5 = tpu.matmul %3, %4, %cst_5 {dimension_numbers = #tpu.dot_dimension_numbers<[1], [0], [0], [1], [0, 0, 1, 1], [], []>} : vector<64x128xbf16>, vector<128x128xbf16>, vector<64x128xf32> -> vector<64x128xf32>
    %6 = arith.addf %0, %5 : vector<64x128xf32>
    %c0_6 = arith.constant 0 : index
    %c0_7 = arith.constant 0 : index
    %c1 = arith.constant 1 : index
    %c0_8 = arith.constant 0 : index
    %7 = vector.load %arg1[%c0_6, %c0_7, %c1, %c0_8] : memref<1x10x10x128xbf16, #tpu.memory_space<vmem>>, vector<1x8x8x128xbf16>
    %8 = vector.shape_cast %7 : vector<1x8x8x128xbf16> to vector<8x8x128xbf16>
    %9 = vector.shape_cast %8 : vector<8x8x128xbf16> to vector<64x128xbf16>
    %c128 = arith.constant 128 : index
    %c0_9 = arith.constant 0 : index
    %10 = vector.load %arg2[%c128, %c0_9] : memref<1152x128xbf16, #tpu.memory_space<vmem>>, vector<128x128xbf16>
    %cst_10 = arith.constant dense<0.000000e+00> : vector<64x128xf32>
    %11 = tpu.matmul %9, %10, %cst_10 {dimension_numbers = #tpu.dot_dimension_numbers<[1], [0], [0], [1], [0, 0, 1, 1], [], []>} : vector<64x128xbf16>, vector<128x128xbf16>, vector<64x128xf32> -> vector<64x128xf32>
    %12 = arith.addf %6, %11 : vector<64x128xf32>
    %c0_11 = arith.constant 0 : index
    %c0_12 = arith.constant 0 : index
    %c2 = arith.constant 2 : index
    %c0_13 = arith.constant 0 : index
    %13 = vector.load %arg1[%c0_11, %c0_12, %c2, %c0_13] : memref<1x10x10x128xbf16, #tpu.memory_space<vmem>>, vector<1x8x8x128xbf16>
    %14 = vector.shape_cast %13 : vector<1x8x8x128xbf16> to vector<8x8x128xbf16>
    %15 = vector.shape_cast %14 : vector<8x8x128xbf16> to vector<64x128xbf16>
    %c256 = arith.constant 256 : index
    %c0_14 = arith.constant 0 : index
    %16 = vector.load %arg2[%c256, %c0_14] : memref<1152x128xbf16, #tpu.memory_space<vmem>>, vector<128x128xbf16>
    %cst_15 = arith.constant dense<0.000000e+00> : vector<64x128xf32>
    %17 = tpu.matmul %15, %16, %cst_15 {dimension_numbers = #tpu.dot_dimension_numbers<[1], [0], [0], [1], [0, 0, 1, 1], [], []>} : vector<64x128xbf16>, vector<128x128xbf16>, vector<64x128xf32> -> vector<64x128xf32>
    %18 = arith.addf %12, %17 : vector<64x128xf32>
    %c0_16 = arith.constant 0 : index
    %c1_17 = arith.constant 1 : index
    %c0_18 = arith.constant 0 : index
    %c0_19 = arith.constant 0 : index
    %19 = vector.load %arg1[%c0_16, %c1_17, %c0_18, %c0_19] : memref<1x10x10x128xbf16, #tpu.memory_space<vmem>>, vector<1x8x8x128xbf16>
    %20 = vector.shape_cast %19 : vector<1x8x8x128xbf16> to vector<8x8x128xbf16>
    %21 = vector.shape_cast %20 : vector<8x8x128xbf16> to vector<64x128xbf16>
    %c384 = arith.constant 384 : index
    %c0_20 = arith.constant 0 : index
    %22 = vector.load %arg2[%c384, %c0_20] : memref<1152x128xbf16, #tpu.memory_space<vmem>>, vector<128x128xbf16>
    %cst_21 = arith.constant dense<0.000000e+00> : vector<64x128xf32>
    %23 = tpu.matmul %21, %22, %cst_21 {dimension_numbers = #tpu.dot_dimension_numbers<[1], [0], [0], [1], [0, 0, 1, 1], [], []>} : vector<64x128xbf16>, vector<128x128xbf16>, vector<64x128xf32> -> vector<64x128xf32>
    %24 = arith.addf %18, %23 : vector<64x128xf32>
    %c0_22 = arith.constant 0 : index
    %c1_23 = arith.constant 1 : index
    %c1_24 = arith.constant 1 : index
    %c0_25 = arith.constant 0 : index
    %25 = vector.load %arg1[%c0_22, %c1_23, %c1_24, %c0_25] : memref<1x10x10x128xbf16, #tpu.memory_space<vmem>>, vector<1x8x8x128xbf16>
    %26 = vector.shape_cast %25 : vector<1x8x8x128xbf16> to vector<8x8x128xbf16>
    %27 = vector.shape_cast %26 : vector<8x8x128xbf16> to vector<64x128xbf16>
    %c512 = arith.constant 512 : index
    %c0_26 = arith.constant 0 : index
    %28 = vector.load %arg2[%c512, %c0_26] : memref<1152x128xbf16, #tpu.memory_space<vmem>>, vector<128x128xbf16>
    %cst_27 = arith.constant dense<0.000000e+00> : vector<64x128xf32>
    %29 = tpu.matmul %27, %28, %cst_27 {dimension_numbers = #tpu.dot_dimension_numbers<[1], [0], [0], [1], [0, 0, 1, 1], [], []>} : vector<64x128xbf16>, vector<128x128xbf16>, vector<64x128xf32> -> vector<64x128xf32>
    %30 = arith.addf %24, %29 : vector<64x128xf32>
    %c0_28 = arith.constant 0 : index
    %c1_29 = arith.constant 1 : index
    %c2_30 = arith.constant 2 : index
    %c0_31 = arith.constant 0 : index
    %31 = vector.load %arg1[%c0_28, %c1_29, %c2_30, %c0_31] : memref<1x10x10x128xbf16, #tpu.memory_space<vmem>>, vector<1x8x8x128xbf16>
    %32 = vector.shape_cast %31 : vector<1x8x8x128xbf16> to vector<8x8x128xbf16>
    %33 = vector.shape_cast %32 : vector<8x8x128xbf16> to vector<64x128xbf16>
    %c640 = arith.constant 640 : index
    %c0_32 = arith.constant 0 : index
    %34 = vector.load %arg2[%c640, %c0_32] : memref<1152x128xbf16, #tpu.memory_space<vmem>>, vector<128x128xbf16>
    %cst_33 = arith.constant dense<0.000000e+00> : vector<64x128xf32>
    %35 = tpu.matmul %33, %34, %cst_33 {dimension_numbers = #tpu.dot_dimension_numbers<[1], [0], [0], [1], [0, 0, 1, 1], [], []>} : vector<64x128xbf16>, vector<128x128xbf16>, vector<64x128xf32> -> vector<64x128xf32>
    %36 = arith.addf %30, %35 : vector<64x128xf32>
    %c0_34 = arith.constant 0 : index
    %c2_35 = arith.constant 2 : index
    %c0_36 = arith.constant 0 : index
    %c0_37 = arith.constant 0 : index
    %37 = vector.load %arg1[%c0_34, %c2_35, %c0_36, %c0_37] : memref<1x10x10x128xbf16, #tpu.memory_space<vmem>>, vector<1x8x8x128xbf16>
    %38 = vector.shape_cast %37 : vector<1x8x8x128xbf16> to vector<8x8x128xbf16>
    %39 = vector.shape_cast %38 : vector<8x8x128xbf16> to vector<64x128xbf16>
    %c768 = arith.constant 768 : index
    %c0_38 = arith.constant 0 : index
    %40 = vector.load %arg2[%c768, %c0_38] : memref<1152x128xbf16, #tpu.memory_space<vmem>>, vector<128x128xbf16>
    %cst_39 = arith.constant dense<0.000000e+00> : vector<64x128xf32>
    %41 = tpu.matmul %39, %40, %cst_39 {dimension_numbers = #tpu.dot_dimension_numbers<[1], [0], [0], [1], [0, 0, 1, 1], [], []>} : vector<64x128xbf16>, vector<128x128xbf16>, vector<64x128xf32> -> vector<64x128xf32>
    %42 = arith.addf %36, %41 : vector<64x128xf32>
    %c0_40 = arith.constant 0 : index
    %c2_41 = arith.constant 2 : index
    %c1_42 = arith.constant 1 : index
    %c0_43 = arith.constant 0 : index
    %43 = vector.load %arg1[%c0_40, %c2_41, %c1_42, %c0_43] : memref<1x10x10x128xbf16, #tpu.memory_space<vmem>>, vector<1x8x8x128xbf16>
    %44 = vector.shape_cast %43 : vector<1x8x8x128xbf16> to vector<8x8x128xbf16>
    %45 = vector.shape_cast %44 : vector<8x8x128xbf16> to vector<64x128xbf16>
    %c896 = arith.constant 896 : index
    %c0_44 = arith.constant 0 : index
    %46 = vector.load %arg2[%c896, %c0_44] : memref<1152x128xbf16, #tpu.memory_space<vmem>>, vector<128x128xbf16>
    %cst_45 = arith.constant dense<0.000000e+00> : vector<64x128xf32>
    %47 = tpu.matmul %45, %46, %cst_45 {dimension_numbers = #tpu.dot_dimension_numbers<[1], [0], [0], [1], [0, 0, 1, 1], [], []>} : vector<64x128xbf16>, vector<128x128xbf16>, vector<64x128xf32> -> vector<64x128xf32>
    %48 = arith.addf %42, %47 : vector<64x128xf32>
    %c0_46 = arith.constant 0 : index
    %c2_47 = arith.constant 2 : index
    %c2_48 = arith.constant 2 : index
    %c0_49 = arith.constant 0 : index
    %49 = vector.load %arg1[%c0_46, %c2_47, %c2_48, %c0_49] : memref<1x10x10x128xbf16, #tpu.memory_space<vmem>>, vector<1x8x8x128xbf16>
    %50 = vector.shape_cast %49 : vector<1x8x8x128xbf16> to vector<8x8x128xbf16>
    %51 = vector.shape_cast %50 : vector<8x8x128xbf16> to vector<64x128xbf16>
    %c1024 = arith.constant 1024 : index
    %c0_50 = arith.constant 0 : index
    %52 = vector.load %arg2[%c1024, %c0_50] : memref<1152x128xbf16, #tpu.memory_space<vmem>>, vector<128x128xbf16>
    %cst_51 = arith.constant dense<0.000000e+00> : vector<64x128xf32>
    %53 = tpu.matmul %51, %52, %cst_51 {dimension_numbers = #tpu.dot_dimension_numbers<[1], [0], [0], [1], [0, 0, 1, 1], [], []>} : vector<64x128xbf16>, vector<128x128xbf16>, vector<64x128xf32> -> vector<64x128xf32>
    %54 = arith.addf %48, %53 : vector<64x128xf32>
    %55 = arith.truncf %54 : vector<64x128xf32> to vector<64x128xbf16>
    %56 = vector.shape_cast %55 : vector<64x128xbf16> to vector<1x64x128xbf16>
    %c0_52 = arith.constant 0 : index
    %c0_53 = arith.constant 0 : index
    %c0_54 = arith.constant 0 : index
    %57 = vector.load %arg3[%c0_52, %c0_53, %c0_54] : memref<1x64x128xbf16, #tpu.memory_space<vmem>>, vector<1x64x128xbf16>
    tpu.vector_store %arg3[%c0_52, %c0_53, %c0_54], %56 {strides = array<i32>} : memref<1x64x128xbf16, #tpu.memory_space<vmem>>, vector<1x64x128xbf16>,
    %cst_55 = arith.constant dense<0.000000e+00> : vector<128xf32>
    %58 = vector.multi_reduction <add>, %54, %cst_55 [0] : vector<64x128xf32> to vector<128xf32>
    %59 = vector.shape_cast %58 : vector<128xf32> to vector<1x128xf32>
    %60 = vector.shape_cast %59 : vector<1x128xf32> to vector<1x1x128xf32>
    %c0_56 = arith.constant 0 : index
    %c0_57 = arith.constant 0 : index
    %c0_58 = arith.constant 0 : index
    %61 = vector.load %arg4[%c0_56, %c0_57, %c0_58] : memref<1x1x128xf32, #tpu.memory_space<vmem>>, vector<1x1x128xf32>
    tpu.vector_store %arg4[%c0_56, %c0_57, %c0_58], %60 {strides = array<i32>} : memref<1x1x128xf32, #tpu.memory_space<vmem>>, vector<1x1x128xf32>,
    %62 = arith.mulf %54, %54 : vector<64x128xf32>
    %cst_59 = arith.constant dense<0.000000e+00> : vector<128xf32>
    %63 = vector.multi_reduction <add>, %62, %cst_59 [0] : vector<64x128xf32> to vector<128xf32>
    %64 = vector.shape_cast %63 : vector<128xf32> to vector<1x128xf32>
    %65 = vector.shape_cast %64 : vector<1x128xf32> to vector<1x1x128xf32>
    %c0_60 = arith.constant 0 : index
    %c0_61 = arith.constant 0 : index
    %c0_62 = arith.constant 0 : index
    %66 = vector.load %arg5[%c0_60, %c0_61, %c0_62] : memref<1x1x128xf32, #tpu.memory_space<vmem>>, vector<1x1x128xf32>
    tpu.vector_store %arg5[%c0_60, %c0_61, %c0_62], %65 {strides = array<i32>} : memref<1x1x128xf32, #tpu.memory_space<vmem>>, vector<1x1x128xf32>,
    return
  }
  func.func @transform_0(%arg0: i32) -> (i32, i32, i32, i32) {
    %c0_i32 = arith.constant 0 : i32
    %c0_i32_0 = arith.constant 0 : i32
    %c0_i32_1 = arith.constant 0 : i32
    %c0_i32_2 = arith.constant 0 : i32
    return %arg0, %c0_i32, %c0_i32_0, %c0_i32_1 : i32, i32, i32, i32
  }
  func.func @transform_1(%arg0: i32) -> (i32, i32) {
    %c0_i32 = arith.constant 0 : i32
    %c0_i32_0 = arith.constant 0 : i32
    %c0_i32_1 = arith.constant 0 : i32
    return %c0_i32, %c0_i32_0 : i32, i32
  }
  func.func @transform_2(%arg0: i32) -> (i32, i32, i32) {
    %c0_i32 = arith.constant 0 : i32
    %c0_i32_0 = arith.constant 0 : i32
    %c0_i32_1 = arith.constant 0 : i32
    return %arg0, %c0_i32, %c0_i32_0 : i32, i32, i32
  }
  func.func @transform_3(%arg0: i32) -> (i32, i32, i32) {
    %c0_i32 = arith.constant 0 : i32
    %c0_i32_0 = arith.constant 0 : i32
    %c0_i32_1 = arith.constant 0 : i32
    return %arg0, %c0_i32, %c0_i32_0 : i32, i32, i32
  }
  func.func @transform_4(%arg0: i32) -> (i32, i32, i32) {
    %c0_i32 = arith.constant 0 : i32
    %c0_i32_0 = arith.constant 0 : i32
    %c0_i32_1 = arith.constant 0 : i32
    return %arg0, %c0_i32, %c0_i32_0 : i32, i32, i32
  }
}

module attributes {stable_mosaic.version = 11 : i64} {
  func.func @_bn_add_relu_proj_kernel(%arg0: i32, %arg1: memref<1x64x128xbf16, #tpu.memory_space<vmem>>, %arg2: memref<1x64x128xbf16, #tpu.memory_space<vmem>>, %arg3: memref<1x1x128xf32, #tpu.memory_space<vmem>>, %arg4: memref<1x1x128xf32, #tpu.memory_space<vmem>>, %arg5: memref<1x1x128xf32, #tpu.memory_space<vmem>>, %arg6: memref<1x1x128xf32, #tpu.memory_space<vmem>>, %arg7: memref<1x64x128xf32, #tpu.memory_space<vmem>>) attributes {dimension_semantics = [#tpu.dimension_semantics<parallel>], iteration_bounds = array<i64: 2>, scalar_prefetch = 0 : i64, scratch_operands = 0 : i64, tpu.core_type = #tpu.core_type<tc>, window_params = [{transform_indices = @transform_0, window_bounds = array<i64: 1, 64, 128>}, {transform_indices = @transform_1, window_bounds = array<i64: 1, 64, 128>}, {pipeline_mode = #tpu.pipeline_mode<synchronous>, transform_indices = @transform_2, window_bounds = array<i64: 1, 1, 128>}, {pipeline_mode = #tpu.pipeline_mode<synchronous>, transform_indices = @transform_3, window_bounds = array<i64: 1, 1, 128>}, {pipeline_mode = #tpu.pipeline_mode<synchronous>, transform_indices = @transform_4, window_bounds = array<i64: 1, 1, 128>}, {pipeline_mode = #tpu.pipeline_mode<synchronous>, transform_indices = @transform_5, window_bounds = array<i64: 1, 1, 128>}, {transform_indices = @transform_6, window_bounds = array<i64: 1, 64, 128>}]} {
    %c0 = arith.constant 0 : index
    %c0_0 = arith.constant 0 : index
    %c0_1 = arith.constant 0 : index
    %0 = vector.load %arg1[%c0, %c0_0, %c0_1] : memref<1x64x128xbf16, #tpu.memory_space<vmem>>, vector<1x64x128xbf16>
    %1 = arith.extf %0 : vector<1x64x128xbf16> to vector<1x64x128xf32>
    %c0_2 = arith.constant 0 : index
    %c0_3 = arith.constant 0 : index
    %c0_4 = arith.constant 0 : index
    %2 = vector.load %arg3[%c0_2, %c0_3, %c0_4] : memref<1x1x128xf32, #tpu.memory_space<vmem>>, vector<1x1x128xf32>
    %3 = vector.broadcast %2 : vector<1x1x128xf32> to vector<1x64x128xf32>
    %4 = arith.mulf %1, %3 : vector<1x64x128xf32>
    %c0_5 = arith.constant 0 : index
    %c0_6 = arith.constant 0 : index
    %c0_7 = arith.constant 0 : index
    %5 = vector.load %arg4[%c0_5, %c0_6, %c0_7] : memref<1x1x128xf32, #tpu.memory_space<vmem>>, vector<1x1x128xf32>
    %6 = vector.broadcast %5 : vector<1x1x128xf32> to vector<1x64x128xf32>
    %7 = arith.addf %4, %6 : vector<1x64x128xf32>
    %c0_8 = arith.constant 0 : index
    %c0_9 = arith.constant 0 : index
    %c0_10 = arith.constant 0 : index
    %8 = vector.load %arg2[%c0_8, %c0_9, %c0_10] : memref<1x64x128xbf16, #tpu.memory_space<vmem>>, vector<1x64x128xbf16>
    %9 = arith.extf %8 : vector<1x64x128xbf16> to vector<1x64x128xf32>
    %c0_11 = arith.constant 0 : index
    %c0_12 = arith.constant 0 : index
    %c0_13 = arith.constant 0 : index
    %10 = vector.load %arg5[%c0_11, %c0_12, %c0_13] : memref<1x1x128xf32, #tpu.memory_space<vmem>>, vector<1x1x128xf32>
    %11 = vector.broadcast %10 : vector<1x1x128xf32> to vector<1x64x128xf32>
    %12 = arith.mulf %9, %11 : vector<1x64x128xf32>
    %13 = arith.addf %7, %12 : vector<1x64x128xf32>
    %c0_14 = arith.constant 0 : index
    %c0_15 = arith.constant 0 : index
    %c0_16 = arith.constant 0 : index
    %14 = vector.load %arg6[%c0_14, %c0_15, %c0_16] : memref<1x1x128xf32, #tpu.memory_space<vmem>>, vector<1x1x128xf32>
    %15 = vector.broadcast %14 : vector<1x1x128xf32> to vector<1x64x128xf32>
    %16 = arith.addf %13, %15 : vector<1x64x128xf32>
    %cst = arith.constant 0.000000e+00 : f32
    %17 = vector.broadcast %cst : f32 to vector<1x64x128xf32>
    %18 = arith.maximumf %16, %17 : vector<1x64x128xf32>
    %c0_17 = arith.constant 0 : index
    %c0_18 = arith.constant 0 : index
    %c0_19 = arith.constant 0 : index
    %19 = vector.load %arg7[%c0_17, %c0_18, %c0_19] : memref<1x64x128xf32, #tpu.memory_space<vmem>>, vector<1x64x128xf32>
    tpu.vector_store %arg7[%c0_17, %c0_18, %c0_19], %18 {strides = array<i32>} : memref<1x64x128xf32, #tpu.memory_space<vmem>>, vector<1x64x128xf32>,
    return
  }
  func.func @transform_0(%arg0: i32) -> (i32, i32, i32) {
    %c0_i32 = arith.constant 0 : i32
    %c0_i32_0 = arith.constant 0 : i32
    %c0_i32_1 = arith.constant 0 : i32
    return %arg0, %c0_i32, %c0_i32_0 : i32, i32, i32
  }
  func.func @transform_1(%arg0: i32) -> (i32, i32, i32) {
    %c0_i32 = arith.constant 0 : i32
    %c0_i32_0 = arith.constant 0 : i32
    %c0_i32_1 = arith.constant 0 : i32
    return %arg0, %c0_i32, %c0_i32_0 : i32, i32, i32
  }
  func.func @transform_2(%arg0: i32) -> (i32, i32, i32) {
    %c0_i32 = arith.constant 0 : i32
    %c0_i32_0 = arith.constant 0 : i32
    %c0_i32_1 = arith.constant 0 : i32
    %c0_i32_2 = arith.constant 0 : i32
    return %c0_i32, %c0_i32_0, %c0_i32_1 : i32, i32, i32
  }
  func.func @transform_3(%arg0: i32) -> (i32, i32, i32) {
    %c0_i32 = arith.constant 0 : i32
    %c0_i32_0 = arith.constant 0 : i32
    %c0_i32_1 = arith.constant 0 : i32
    %c0_i32_2 = arith.constant 0 : i32
    return %c0_i32, %c0_i32_0, %c0_i32_1 : i32, i32, i32
  }
  func.func @transform_4(%arg0: i32) -> (i32, i32, i32) {
    %c0_i32 = arith.constant 0 : i32
    %c0_i32_0 = arith.constant 0 : i32
    %c0_i32_1 = arith.constant 0 : i32
    %c0_i32_2 = arith.constant 0 : i32
    return %c0_i32, %c0_i32_0, %c0_i32_1 : i32, i32, i32
  }
  func.func @transform_5(%arg0: i32) -> (i32, i32, i32) {
    %c0_i32 = arith.constant 0 : i32
    %c0_i32_0 = arith.constant 0 : i32
    %c0_i32_1 = arith.constant 0 : i32
    %c0_i32_2 = arith.constant 0 : i32
    return %c0_i32, %c0_i32_0, %c0_i32_1 : i32, i32, i32
  }
  func.func @transform_6(%arg0: i32) -> (i32, i32, i32) {
    %c0_i32 = arith.constant 0 : i32
    %c0_i32_0 = arith.constant 0 : i32
    %c0_i32_1 = arith.constant 0 : i32
    return %arg0, %c0_i32, %c0_i32_0 : i32, i32, i32
  }
}

module attributes {stable_mosaic.version = 11 : i64} {
  func.func @_gemm_stats_kernel(%arg0: i32, %arg1: memref<128x4xbf16, #tpu.memory_space<vmem>>, %arg2: memref<4x128xbf16, #tpu.memory_space<vmem>>, %arg3: memref<128x128xbf16, #tpu.memory_space<vmem>>, %arg4: memref<1x1x128xf32, #tpu.memory_space<vmem>>, %arg5: memref<1x1x128xf32, #tpu.memory_space<vmem>>) attributes {dimension_semantics = [#tpu.dimension_semantics<parallel>], iteration_bounds = array<i64: 1>, scalar_prefetch = 0 : i64, scratch_operands = 0 : i64, tpu.core_type = #tpu.core_type<tc>, window_params = [{transform_indices = @transform_0, window_bounds = array<i64: 128, 4>}, {pipeline_mode = #tpu.pipeline_mode<synchronous>, transform_indices = @transform_1, window_bounds = array<i64: 4, 128>}, {transform_indices = @transform_2, window_bounds = array<i64: 128, 128>}, {transform_indices = @transform_3, window_bounds = array<i64: 1, 1, 128>}, {transform_indices = @transform_4, window_bounds = array<i64: 1, 1, 128>}]} {
    %c0 = arith.constant 0 : index
    %c0_0 = arith.constant 0 : index
    %0 = vector.load %arg1[%c0, %c0_0] : memref<128x4xbf16, #tpu.memory_space<vmem>>, vector<128x4xbf16>
    %c0_1 = arith.constant 0 : index
    %c0_2 = arith.constant 0 : index
    %1 = vector.load %arg2[%c0_1, %c0_2] : memref<4x128xbf16, #tpu.memory_space<vmem>>, vector<4x128xbf16>
    %cst = arith.constant dense<0.000000e+00> : vector<128x128xf32>
    %2 = tpu.matmul %0, %1, %cst {dimension_numbers = #tpu.dot_dimension_numbers<[1], [0], [0], [1], [0, 0, 1, 1], [], []>} : vector<128x4xbf16>, vector<4x128xbf16>, vector<128x128xf32> -> vector<128x128xf32>
    %3 = arith.truncf %2 : vector<128x128xf32> to vector<128x128xbf16>
    %c0_3 = arith.constant 0 : index
    %c0_4 = arith.constant 0 : index
    %4 = vector.load %arg3[%c0_3, %c0_4] : memref<128x128xbf16, #tpu.memory_space<vmem>>, vector<128x128xbf16>
    tpu.vector_store %arg3[%c0_3, %c0_4], %3 {strides = array<i32>} : memref<128x128xbf16, #tpu.memory_space<vmem>>, vector<128x128xbf16>,
    %cst_5 = arith.constant dense<0.000000e+00> : vector<128xf32>
    %5 = vector.multi_reduction <add>, %2, %cst_5 [0] : vector<128x128xf32> to vector<128xf32>
    %6 = vector.shape_cast %5 : vector<128xf32> to vector<1x128xf32>
    %7 = vector.shape_cast %6 : vector<1x128xf32> to vector<1x1x128xf32>
    %c0_6 = arith.constant 0 : index
    %c0_7 = arith.constant 0 : index
    %c0_8 = arith.constant 0 : index
    %8 = vector.load %arg4[%c0_6, %c0_7, %c0_8] : memref<1x1x128xf32, #tpu.memory_space<vmem>>, vector<1x1x128xf32>
    tpu.vector_store %arg4[%c0_6, %c0_7, %c0_8], %7 {strides = array<i32>} : memref<1x1x128xf32, #tpu.memory_space<vmem>>, vector<1x1x128xf32>,
    %9 = arith.mulf %2, %2 : vector<128x128xf32>
    %cst_9 = arith.constant dense<0.000000e+00> : vector<128xf32>
    %10 = vector.multi_reduction <add>, %9, %cst_9 [0] : vector<128x128xf32> to vector<128xf32>
    %11 = vector.shape_cast %10 : vector<128xf32> to vector<1x128xf32>
    %12 = vector.shape_cast %11 : vector<1x128xf32> to vector<1x1x128xf32>
    %c0_10 = arith.constant 0 : index
    %c0_11 = arith.constant 0 : index
    %c0_12 = arith.constant 0 : index
    %13 = vector.load %arg5[%c0_10, %c0_11, %c0_12] : memref<1x1x128xf32, #tpu.memory_space<vmem>>, vector<1x1x128xf32>
    tpu.vector_store %arg5[%c0_10, %c0_11, %c0_12], %12 {strides = array<i32>} : memref<1x1x128xf32, #tpu.memory_space<vmem>>, vector<1x1x128xf32>,
    return
  }
  func.func @transform_0(%arg0: i32) -> (i32, i32) {
    %c0_i32 = arith.constant 0 : i32
    %c0_i32_0 = arith.constant 0 : i32
    return %arg0, %c0_i32 : i32, i32
  }
  func.func @transform_1(%arg0: i32) -> (i32, i32) {
    %c0_i32 = arith.constant 0 : i32
    %c0_i32_0 = arith.constant 0 : i32
    %c0_i32_1 = arith.constant 0 : i32
    return %c0_i32, %c0_i32_0 : i32, i32
  }
  func.func @transform_2(%arg0: i32) -> (i32, i32) {
    %c0_i32 = arith.constant 0 : i32
    %c0_i32_0 = arith.constant 0 : i32
    return %arg0, %c0_i32 : i32, i32
  }
  func.func @transform_3(%arg0: i32) -> (i32, i32, i32) {
    %c0_i32 = arith.constant 0 : i32
    %c0_i32_0 = arith.constant 0 : i32
    %c0_i32_1 = arith.constant 0 : i32
    return %arg0, %c0_i32, %c0_i32_0 : i32, i32, i32
  }
  func.func @transform_4(%arg0: i32) -> (i32, i32, i32) {
    %c0_i32 = arith.constant 0 : i32
    %c0_i32_0 = arith.constant 0 : i32
    %c0_i32_1 = arith.constant 0 : i32
    return %arg0, %c0_i32, %c0_i32_0 : i32, i32, i32
  }
}

</mosaic_0001>

<bundles_post_ra>
// kernel: basic_block_forward.6
= control target key start
LH: loop header
LB: loop body
LE: loop exit
PB: predicated region body
PF: predicated region fallthrough
CT: control target
= control target key end

     0   :  { %s383_s12 = smov 0   ;;  %s413_s0 = inlined_call_operand.vmem [shape: bf16[2,64,128], index: 0, kind: input, shape index: {}]   ;;  %s414_s1 = inlined_call_operand.vmem [shape: f32[1,1,128], index: 1, kind: input, shape index: {}]   ;;  %s415_s2 = inlined_call_operand.vmem [shape: f32[1,1,128], index: 2, kind: input, shape index: {}]   ;;  %s416_s3 = inlined_call_operand.vmem [shape: bf16[2,64,128], index: 3, kind: output, shape index: {}]  }
   0x1 LB: > { %s290_s13 = sadd.s32 4294967295, %s361_s12   ;;  %p294_p0 = scmp.ge.s32.totalorder %s361_s12, 1  ;;  %s361_s12 = sphi %s383_s12, %s13_s12  }
   0x2   : > { %p137_p1 = scmp.lt.s32.totalorder %s361_s12, 3 }
   0x4   : > { %p138_p2 = pnand %p294_p0, %p137_p1 }
   0x5   : > { %p161_p3 = scmp.lt.s32.totalorder (!%p138_p2), %s290_s13, 1 }
   0x6   : > { %141 = sbr.rel (%p138_p2) target bundleno = 29 (0x1d), region = 32 }
   0xb   : > { %s418_s13 = smov (!%p161_p3, %s290_s13), 1  ;;  %v353_v0 = vld [vmem:[%s414_s1] ss:$0 sm:$0xff] }
   0xc   : > { %s301_s14 = sshll.u32 %s418_s13, 5  ;;  %v354_v6 = vld [vmem:[%s415_s2] ss:$0 sm:$0xff] }
   0xd   : > { %s165_s17 = scalar_lea.vmem %s413_s0, %s301_s14  ;;  %s170_s24 = scalar_lea.vmem %s416_s3, %s301_s14 }
   0xe   : > { %v304_v1 = vld [vmem:[%s165_s17] sm:$0xff]   ;;  %v339_v2 = vld [vmem:[%s165_s17 + $0x8] sm:$0xff]   ;;  %v340_v3 = vld [vmem:[%s165_s17 + $0x10] sm:$0xff]  }
   0xf   : > { %v305_v4 = vunpack.c.l.bf16 %v304_v1  ;;  %v306_v5 = vunpack.c.h.bf16 %v304_v1  ;;  %v309_v7 = vunpack.c.l.bf16 %v339_v2  ;;  %v310_v8 = vunpack.c.h.bf16 %v339_v2  ;;  %v341_v9 = vld [vmem:[%s165_s17 + $0x18] sm:$0xff]  }
  0x10   : > { %v313_v10 = vunpack.c.l.bf16 %v340_v3  ;;  %v314_v11 = vunpack.c.h.bf16 %v340_v3  ;;  %v317_v12 = vunpack.c.l.bf16 %v341_v9  ;;  %v318_v13 = vunpack.c.h.bf16 %v341_v9 }
  0x11   : > { %v191_v14 = vmul.f32 %v353_v0, %v305_v4  ;;  %v192_v15 = vmul.f32 %v353_v0, %v306_v5  ;;  %v193_v16 = vmul.f32 %v353_v0, %v309_v7  ;;  %v194_v17 = vmul.f32 %v353_v0, %v310_v8 }
  0x12   : > { %v195_v18 = vmul.f32 %v353_v0, %v313_v10  ;;  %v196_v19 = vmul.f32 %v353_v0, %v314_v11  ;;  %v197_v20 = vmul.f32 %v353_v0, %v317_v12  ;;  %v198_v21 = vmul.f32 %v353_v0, %v318_v13 }
  0x13   : > { %v203_v22 = vadd.f32 %v354_v6, %v191_v14  ;;  %v204_v23 = vadd.f32 %v354_v6, %v192_v15  ;;  %v205_v24 = vadd.f32 %v354_v6, %v193_v16  ;;  %v206_v25 = vadd.f32 %v354_v6, %v194_v17 }
  0x14   : > { %v207_v26 = vadd.f32 %v354_v6, %v195_v18  ;;  %v208_v27 = vadd.f32 %v354_v6, %v196_v19  ;;  %v209_v28 = vadd.f32 %v354_v6, %v197_v20  ;;  %v210_v29 = vadd.f32 %v354_v6, %v198_v21 }
  0x15   : > { %v211_v30 = vmax.f32 %v203_v22, 0.0  ;;  %v212_v31 = vmax.f32 %v204_v23, 0.0  ;;  %v213_v32 = vmax.f32 %v205_v24, 0.0  ;;  %v214_v33 = vmax.f32 %v206_v25, 0.0 }
  0x16   : > { %v215_v34 = vmax.f32 %v207_v26, 0.0  ;;  %v216_v35 = vmax.f32 %v208_v27, 0.0  ;;  %v217_v36 = vmax.f32 %v209_v28, 0.0  ;;  %v218_v37 = vmax.f32 %v210_v29, 0.0 }
  0x17   : > { %v322_v38 = vpack.c.bf16 %v212_v31, %v211_v30  ;;  %v327_v39 = vpack.c.bf16 %v214_v33, %v213_v32 }
  0x18   : > { %v332_v40 = vpack.c.bf16 %v216_v35, %v215_v34  ;;  %v337_v41 = vpack.c.bf16 %v218_v37, %v217_v36 }
  0x19   : > { %323 = vst [vmem:[%s170_s24] sm:$0xff] %v322_v38  }
  0x1a   : > { %342 = vst [vmem:[%s170_s24 + $0x8] sm:$0xff] %v327_v39  }
  0x1b   : > { %343 = vst [vmem:[%s170_s24 + $0x10] sm:$0xff] %v332_v40  }
  0x1c   : > { %344 = vst [vmem:[%s170_s24 + $0x18] sm:$0xff] %v337_v41  }
  0x1d PF: > { %s13_s12 = sadd.s32 1, %s361_s12  }
  0x1e   : > { %p10_p4 = scmp.ge.s32.totalorder %s13_s12, 4  }
  0x20   :  { %12 = sbr.rel (!%p10_p4) target bundleno = 1 (0x1), region = 62 }

// kernel: basic_block_forward.5
= control target key start
LH: loop header
LB: loop body
LE: loop exit
PB: predicated region body
PF: predicated region fallthrough
CT: control target
= control target key end

     0   :  { %vm116_vm0 = vcmask 1041408   ;;  %vm91_vm1 = vcmask 293888   ;;  %s489_s1 = inlined_call_operand.vmem [shape: bf16[36,128], index: 1, kind: input, shape index: {}]   ;;  %s490_s0 = inlined_call_operand.vmem [shape: bf16[128,36], index: 0, kind: input, shape index: {}]   ;;  %s491_s2 = inlined_call_operand.vmem [shape: bf16[128,128], index: 2, kind: output, shape index: {0}]   ;;  %s492_s3 = inlined_call_operand.vmem [shape: f32[1,1,128], index: 3, kind: output, shape index: {1}]   ;;  %s493_s4 = inlined_call_operand.vmem [shape: f32[1,1,128], index: 4, kind: output, shape index: {2}]  }
   0x1   :  { %v35_v0 = vld [vmem:[%s489_s1 + $0x10] sm:$0x3]  ;;  %v330_v4 = vld [vmem:[%s489_s1 + $0x8] sm:$0xff]  ;;  %v329_v5 = vld [vmem:[%s489_s1] sm:$0xff] }
   0x2   :  { %v85_v1 = vunpack.c.l.b16 %v35_v0  ;;  %v321_v6 = vld [vmem:[%s490_s0] sm:$0xff]  ;;  %v323_v7 = vld [vmem:[%s490_s0 + $0x10] sm:$0xff]  ;;  %v322_v10 = vld [vmem:[%s490_s0 + $0x8] sm:$0xff] }
   0x3   :  { %v325_v8 = vld [vmem:[%s490_s0 + $0x20] sm:$0xff]  ;;  %v327_v9 = vld [vmem:[%s490_s0 + $0x30] sm:$0xff]  ;;  %v324_v11 = vld [vmem:[%s490_s0 + $0x18] sm:$0xff] }
   0x4   :  { %v88_v2 = vpack.c.b16 %v85_v1, %v85_v1  ;;  %v326_v12 = vld [vmem:[%s490_s0 + $0x28] sm:$0xff]  ;;  %v328_v13 = vld [vmem:[%s490_s0 + $0x38] sm:$0xff] }
   0x6   :  { %v118_v3 = vsel %vm116_vm0, %v88_v2, 0 }
   0x7   :  { %125 = vmatpush.bf16.msra.mxu0 %v118_v3  ;;  %378 = vmatpush.bf16.msra.mxu1 %v118_v3 }
   0x8   :  { %379 = vmatpush.bf16.msra.mxu2 %v118_v3  ;;  %380 = vmatpush.bf16.msra.mxu3 %v118_v3 }
   0xb   :  { %126 = vmatpush.bf16.msra.mxu0 %v330_v4  ;;  %381 = vmatpush.bf16.msra.mxu1 %v330_v4 }
   0xc   :  { %382 = vmatpush.bf16.msra.mxu2 %v330_v4  ;;  %383 = vmatpush.bf16.msra.mxu3 %v330_v4 }
   0xf   :  { %127 = vmatpush.bf16.msra.mxu0 %v329_v5  ;;  %384 = vmatpush.bf16.msra.mxu1 %v329_v5 }
  0x10   :  { %385 = vmatpush.bf16.msra.mxu2 %v329_v5  ;;  %386 = vmatpush.bf16.msra.mxu3 %v329_v5 }
  0x12   :  { %313 = vmatmul.msk.bf16.vlgmr.msra.gmra.mxu0 %vm91_vm1, %v321_v6  ;;  %315 = vmatmul.msk.bf16.vlgmr.msra.gmra.mxu1 %vm91_vm1, %v323_v7 }
  0x13   :  { %317 = vmatmul.msk.bf16.vlgmr.msra.gmra.mxu2 %vm91_vm1, %v325_v8  ;;  %319 = vmatmul.msk.bf16.vlgmr.msra.gmra.mxu3 %vm91_vm1, %v327_v9 }
  0x22   :  { %314 = vmatmul.msk.bf16.gmra.mxu0 %vm91_vm1, %v322_v10  ;;  %316 = vmatmul.msk.bf16.gmra.mxu1 %vm91_vm1, %v324_v11 }
  0x23   :  { %318 = vmatmul.msk.bf16.gmra.mxu2 %vm91_vm1, %v326_v12  ;;  %320 = vmatmul.msk.bf16.gmra.mxu3 %vm91_vm1, %v328_v13 }
  0x8f   :  { %v129_v14 = vpop.f32.mrf.mxu0  ;;  %v139_v15 = vpop.f32.mrf.mxu1 }
  0x90   :  { %v223_v29 = vmul.f32 %v129_v14, %v129_v14  ;;  %v227_v43 = vmul.f32 %v139_v15, %v139_v15 }
  0x96   :  { %v149_v16 = vpop.f32.mrf.mxu2  ;;  %v453_v17 = vpop.f32.mrf.mxu3 }
  0x97   :  { %v131_v18 = vpop.f32.mrf.mxu0  ;;  %v141_v19 = vpop.f32.mrf.mxu1  ;;  %v231_v59 = vmul.f32 %v149_v16, %v149_v16  ;;  %v235_v7 = vmul.f32 %v453_v17, %v453_v17 }
  0x98   :  { %v334_v20 = vpack.c.bf16 %v131_v18, %v129_v14  ;;  %v344_v21 = vpack.c.bf16 %v141_v19, %v139_v15  ;;  %v224_v28 = vmul.f32 %v131_v18, %v131_v18  ;;  %v201_v31 = vadd.f32 %v131_v18, %v129_v14 }
  0x99   :  { %v228_v46 = vmul.f32 %v141_v19, %v141_v19 }
  0x9a   :  { %335 = vst [vmem:[%s491_s2] sm:$0xff] %v334_v20   ;;  %v239_v32 = vadd.f32 %v224_v28, %v223_v29 }
  0x9b   :  { %372 = vst [vmem:[%s491_s2 + $0x10] sm:$0xff] %v344_v21  }
  0x9e   :  { %v151_v22 = vpop.f32.mrf.mxu2  ;;  %v161_v23 = vpop.f32.mrf.mxu3 }
  0x9f   :  { %v134_v24 = vpop.f32.mrf.mxu0  ;;  %v144_v25 = vpop.f32.mrf.mxu1  ;;  %v354_v26 = vpack.c.bf16 %v151_v22, %v149_v16  ;;  %v364_v27 = vpack.c.bf16 %v161_v23, %v453_v17  ;;  %v232_v62 = vmul.f32 %v151_v22, %v151_v22  ;;  %v236_v10 = vmul.f32 %v161_v23, %v161_v23 }
  0xa0   :  { %v225_v30 = vmul.f32 %v134_v24, %v134_v24  ;;  %v202_v33 = vadd.f32 %v201_v31, %v134_v24  ;;  %v229_v49 = vmul.f32 %v144_v25, %v144_v25 }
  0xa1   :  { %374 = vst [vmem:[%s491_s2 + $0x20] sm:$0xff] %v354_v26  }
  0xa2   :  { %376 = vst [vmem:[%s491_s2 + $0x30] sm:$0xff] %v364_v27   ;;  %v240_v36 = vadd.f32 %v239_v32, %v225_v30 }
  0xa6   :  { %v154_v34 = vpop.f32.mrf.mxu2  ;;  %v164_v35 = vpop.f32.mrf.mxu3 }
  0xa7   :  { %v136_v37 = vpop.f32.mrf.mxu0  ;;  %v146_v38 = vpop.f32.mrf.mxu1  ;;  %v233_v2 = vmul.f32 %v154_v34, %v154_v34  ;;  %v237_v14 = vmul.f32 %v164_v35, %v164_v35 }
  0xa8   :  { %v339_v39 = vpack.c.bf16 %v136_v37, %v134_v24  ;;  %v203_v40 = vadd.f32 %v202_v33, %v136_v37  ;;  %v226_v41 = vmul.f32 %v136_v37, %v136_v37  ;;  %v349_v42 = vpack.c.bf16 %v146_v38, %v144_v25 }
  0xa9   :  { %v230_v57 = vmul.f32 %v146_v38, %v146_v38 }
  0xaa   :  { %371 = vst [vmem:[%s491_s2 + $0x8] sm:$0xff] %v339_v39   ;;  %v204_v44 = vadd.f32 %v203_v40, %v139_v15  ;;  %v241_v45 = vadd.f32 %v240_v36, %v226_v41 }
  0xab   :  { %373 = vst [vmem:[%s491_s2 + $0x18] sm:$0xff] %v349_v42  }
  0xac   :  { %v242_v47 = vadd.f32 %v241_v45, %v227_v43  ;;  %v205_v48 = vadd.f32 %v204_v44, %v141_v19 }
  0xae   :  { %v206_v50 = vadd.f32 %v205_v48, %v144_v25  ;;  %v243_v51 = vadd.f32 %v242_v47, %v228_v46  ;;  %v156_v52 = vpop.f32.mrf.mxu2  ;;  %v166_v53 = vpop.f32.mrf.mxu3 }
  0xaf   :  { %v359_v54 = vpack.c.bf16 %v156_v52, %v154_v34  ;;  %v369_v55 = vpack.c.bf16 %v166_v53, %v164_v35  ;;  %v234_v6 = vmul.f32 %v156_v52, %v156_v52  ;;  %v238_v19 = vmul.f32 %v166_v53, %v166_v53 }
  0xb0   :  { %v207_v56 = vadd.f32 %v206_v50, %v146_v38  ;;  %v244_v58 = vadd.f32 %v243_v51, %v229_v49 }
  0xb1   :  { %375 = vst [vmem:[%s491_s2 + $0x28] sm:$0xff] %v359_v54  }
  0xb2   :  { %v208_v60 = vadd.f32 %v207_v56, %v149_v16  ;;  %v245_v61 = vadd.f32 %v244_v58, %v230_v57  ;;  %377 = vst [vmem:[%s491_s2 + $0x38] sm:$0xff] %v369_v55  }
  0xb4   :  { %v246_v63 = vadd.f32 %v245_v61, %v231_v59  ;;  %v209_v0 = vadd.f32 %v208_v60, %v151_v22 }
  0xb6   :  { %v210_v1 = vadd.f32 %v209_v0, %v154_v34  ;;  %v247_v3 = vadd.f32 %v246_v63, %v232_v62 }
  0xb8   :  { %v248_v4 = vadd.f32 %v247_v3, %v233_v2  ;;  %v211_v5 = vadd.f32 %v210_v1, %v156_v52 }
  0xba   :  { %v212_v8 = vadd.f32 %v211_v5, %v453_v17  ;;  %v249_v9 = vadd.f32 %v248_v4, %v234_v6 }
  0xbc   :  { %v250_v11 = vadd.f32 %v249_v9, %v235_v7  ;;  %v213_v12 = vadd.f32 %v212_v8, %v161_v23 }
  0xbe   :  { %v214_v13 = vadd.f32 %v213_v12, %v164_v35  ;;  %v251_v15 = vadd.f32 %v250_v11, %v236_v10 }
  0xc0   :  { %v252_v16 = vadd.f32 %v251_v15, %v237_v14  ;;  %v215_v18 = vadd.f32 %v214_v13, %v166_v53 }
  0xc2   :  { %v216_v20 = vrot.slane %v215_v18, 4  ;;  %v253_v21 = vadd.f32 %v252_v16, %v238_v19 }
  0xc4   :  { %v217_v22 = vadd.f32 %v216_v20, %v215_v18  ;;  %v254_v24 = vrot.slane %v253_v21, 4 }
  0xc6   :  { %v218_v25 = vrot.slane %v217_v22, 2  ;;  %v255_v26 = vadd.f32 %v254_v24, %v253_v21 }
  0xc8   :  { %v219_v27 = vadd.f32 %v218_v25, %v217_v22  ;;  %v256_v28 = vrot.slane %v255_v26, 2 }
  0xca   :  { %v220_v29 = vrot.slane %v219_v27, 1  ;;  %v257_v17 = vadd.f32 %v256_v28, %v255_v26 }
  0xcc   :  { %v221_v30 = vadd.f32 %v220_v29, %v219_v27  ;;  %v258_v31 = vrot.slane %v257_v17, 1 }
  0xce   :  { %222 = vst [vmem:[%s492_s3] sm:$0x1] %v221_v30  ;;  %v259_v23 = vadd.f32 %v258_v31, %v257_v17 }
  0xd0   :  { %260 = vst [vmem:[%s493_s4] sm:$0x1] %v259_v23 }

// kernel: basic_block_forward.9
= control target key start
LH: loop header
LB: loop body
LE: loop exit
PB: predicated region body
PF: predicated region fallthrough
CT: control target
= control target key end

     0   :  { %s552_s21 = smov 0   ;;  %s640_s0 = inlined_call_operand.vmem [shape: bf16[2,64,128], index: 0, kind: input, shape index: {}]   ;;  %s641_s1 = inlined_call_operand.vmem [shape: bf16[2,64,128], index: 1, kind: input, shape index: {}]   ;;  %s642_s2 = inlined_call_operand.vmem [shape: f32[1,1,128], index: 2, kind: input, shape index: {}]   ;;  %s643_s3 = inlined_call_operand.vmem [shape: f32[1,1,128], index: 3, kind: input, shape index: {}]   ;;  %s644_s4 = inlined_call_operand.vmem [shape: f32[1,1,128], index: 4, kind: input, shape index: {}]   ;;  %s645_s5 = inlined_call_operand.vmem [shape: f32[1,1,128], index: 5, kind: input, shape index: {}]   ;;  %s646_s6 = inlined_call_operand.vmem [shape: f32[2,64,128], index: 6, kind: output, shape index: {}]  }
   0x1 LB: > { %s443_s22 = sadd.s32 4294967295, %s515_s21   ;;  %p447_p0 = scmp.ge.s32.totalorder %s515_s21, 1  ;;  %s515_s21 = sphi %s552_s21, %s16_s21  }
   0x2   : > { %p222_p1 = scmp.lt.s32.totalorder %s515_s21, 3 }
   0x4   : > { %p223_p2 = pnand %p447_p0, %p222_p1 }
   0x5   : > { %p257_p3 = scmp.lt.s32.totalorder (!%p223_p2), %s443_s22, 1 }
   0x6   : > { %226 = sbr.rel (%p223_p2) target bundleno = 40 (0x28), region = 44 }
   0xb   : > { %s648_s22 = smov (!%p257_p3, %s443_s22), 1  ;;  %v576_v0 = vld [vmem:[%s642_s2] ss:$0 sm:$0xff] }
   0xc   : > { %s456_s23 = sshll.u32 %s648_s22, 5  ;;  %v581_v1 = vld [vmem:[%s644_s4] ss:$0 sm:$0xff]  ;;  %s458_s14 = sshll.u32 %s648_s22, 6 }
   0xd   : > { %s566_s26 = scalar_lea.vmem %s640_s0, %s456_s23  ;;  %s571_s29 = scalar_lea.vmem %s641_s1, %s456_s23  ;;  %v589_v6 = vld [vmem:[%s643_s3] ss:$0 sm:$0xff] }
   0xe   : > { %v460_v2 = vld [vmem:[%s566_s26] sm:$0xff]   ;;  %v491_v4 = vld [vmem:[%s566_s26 + $0x8] sm:$0xff]   ;;  %v492_v15 = vld [vmem:[%s566_s26 + $0x10] sm:$0xff]   ;;  %s620_s17 = scalar_lea.vmem %s646_s6, %s458_s14 }
   0xf   : > { %v476_v3 = vld [vmem:[%s571_s29] sm:$0xff]   ;;  %v461_v5 = vunpack.c.l.bf16 %v460_v2  ;;  %v462_v8 = vunpack.c.h.bf16 %v460_v2  ;;  %v494_v10 = vld [vmem:[%s571_s29 + $0x8] sm:$0xff]   ;;  %v465_v11 = vunpack.c.l.bf16 %v491_v4  ;;  %v466_v13 = vunpack.c.h.bf16 %v491_v4  ;;  %v495_v16 = vld [vmem:[%s571_s29 + $0x10] sm:$0xff]  }
  0x10   : > { %v477_v7 = vunpack.c.l.bf16 %v476_v3  ;;  %v478_v9 = vunpack.c.h.bf16 %v476_v3  ;;  %v481_v12 = vunpack.c.l.bf16 %v494_v10  ;;  %v482_v14 = vunpack.c.h.bf16 %v494_v10  ;;  %v508_v26 = vld [vmem:[%s645_s5] ss:$0 sm:$0xff]  ;;  %v493_v34 = vld [vmem:[%s566_s26 + $0x18] sm:$0xff]  }
  0x11   : > { %v292_v17 = vmul.f32 %v576_v0, %v461_v5  ;;  %v293_v19 = vmul.f32 %v576_v0, %v462_v8  ;;  %v294_v21 = vmul.f32 %v576_v0, %v465_v11  ;;  %v295_v23 = vmul.f32 %v576_v0, %v466_v13  ;;  %v496_v39 = vld [vmem:[%s571_s29 + $0x18] sm:$0xff]  }
  0x12   : > { %v332_v18 = vmul.f32 %v581_v1, %v477_v7  ;;  %v333_v20 = vmul.f32 %v581_v1, %v478_v9  ;;  %v334_v22 = vmul.f32 %v581_v1, %v481_v12  ;;  %v335_v24 = vmul.f32 %v581_v1, %v482_v14 }
  0x13   : > { %v304_v25 = vadd.f32 %v589_v6, %v292_v17  ;;  %v305_v27 = vadd.f32 %v589_v6, %v293_v19  ;;  %v469_v28 = vunpack.c.l.bf16 %v492_v15  ;;  %v485_v29 = vunpack.c.l.bf16 %v495_v16 }
  0x14   : > { %v306_v30 = vadd.f32 %v589_v6, %v294_v21  ;;  %v307_v31 = vadd.f32 %v589_v6, %v295_v23  ;;  %v470_v32 = vunpack.c.h.bf16 %v492_v15  ;;  %v486_v33 = vunpack.c.h.bf16 %v495_v16 }
  0x15   : > { %v340_v35 = vadd.f32 %v332_v18, %v304_v25  ;;  %v341_v36 = vadd.f32 %v333_v20, %v305_v27  ;;  %v296_v37 = vmul.f32 %v576_v0, %v469_v28  ;;  %v336_v38 = vmul.f32 %v581_v1, %v485_v29 }
  0x16   : > { %v342_v40 = vadd.f32 %v334_v22, %v306_v30  ;;  %v343_v41 = vadd.f32 %v335_v24, %v307_v31  ;;  %v297_v42 = vmul.f32 %v576_v0, %v470_v32  ;;  %v337_v43 = vmul.f32 %v581_v1, %v486_v33 }
  0x17   : > { %v352_v44 = vadd.f32 %v508_v26, %v340_v35  ;;  %v353_v45 = vadd.f32 %v508_v26, %v341_v36  ;;  %v308_v46 = vadd.f32 %v589_v6, %v296_v37  ;;  %v473_v47 = vunpack.c.l.bf16 %v493_v34 }
  0x18   : > { %v354_v48 = vadd.f32 %v508_v26, %v342_v40  ;;  %v355_v49 = vadd.f32 %v508_v26, %v343_v41  ;;  %v309_v50 = vadd.f32 %v589_v6, %v297_v42  ;;  %v489_v51 = vunpack.c.l.bf16 %v496_v39 }
  0x19   : > { %v360_v52 = vmax.f32 %v352_v44, 0.0  ;;  %v361_v53 = vmax.f32 %v353_v45, 0.0  ;;  %v344_v54 = vadd.f32 %v336_v38, %v308_v46  ;;  %v298_v55 = vmul.f32 %v576_v0, %v473_v47 }
  0x1a   : > { %v362_v56 = vmax.f32 %v354_v48, 0.0  ;;  %v363_v57 = vmax.f32 %v355_v49, 0.0  ;;  %v345_v58 = vadd.f32 %v337_v43, %v309_v50  ;;  %v338_v59 = vmul.f32 %v581_v1, %v489_v51 }
  0x1b   : > { %368 = vst [vmem:[%s620_s17] sm:$0xff] %v360_v52  ;;  %v356_v60 = vadd.f32 %v508_v26, %v344_v54  ;;  %v310_v61 = vadd.f32 %v589_v6, %v298_v55  ;;  %v474_v62 = vunpack.c.h.bf16 %v493_v34  ;;  %v490_v63 = vunpack.c.h.bf16 %v496_v39 }
  0x1c   : > { %369 = vst [vmem:[%s620_s17 + $0x8] sm:$0xff] %v361_v53  ;;  %v357_v2 = vadd.f32 %v508_v26, %v345_v58 }
  0x1d   : > { %370 = vst [vmem:[%s620_s17 + $0x10] sm:$0xff] %v362_v56  ;;  %v364_v3 = vmax.f32 %v356_v60, 0.0  ;;  %v346_v4 = vadd.f32 %v338_v59, %v310_v61  ;;  %v299_v5 = vmul.f32 %v576_v0, %v474_v62  ;;  %v339_v7 = vmul.f32 %v581_v1, %v490_v63 }
  0x1e   : > { %371 = vst [vmem:[%s620_s17 + $0x18] sm:$0xff] %v363_v57  ;;  %v365_v8 = vmax.f32 %v357_v2, 0.0 }
  0x1f   : > { %372 = vst [vmem:[%s620_s17 + $0x20] sm:$0xff] %v364_v3  ;;  %v358_v9 = vadd.f32 %v508_v26, %v346_v4  ;;  %v311_v10 = vadd.f32 %v589_v6, %v299_v5 }
  0x20   : > { %373 = vst [vmem:[%s620_s17 + $0x28] sm:$0xff] %v365_v8 }
  0x21   : > { %v366_v11 = vmax.f32 %v358_v9, 0.0  ;;  %v347_v12 = vadd.f32 %v339_v7, %v311_v10 }
  0x23   : > { %374 = vst [vmem:[%s620_s17 + $0x30] sm:$0xff] %v366_v11  ;;  %v359_v13 = vadd.f32 %v508_v26, %v347_v12 }
  0x25   : > { %v367_v14 = vmax.f32 %v359_v13, 0.0 }
  0x27   : > { %375 = vst [vmem:[%s620_s17 + $0x38] sm:$0xff] %v367_v14 }
  0x28 PF: > { %s16_s21 = sadd.s32 1, %s515_s21  }
  0x29   : > { %p13_p4 = scmp.ge.s32.totalorder %s16_s21, 4  }
  0x2b   :  { %15 = sbr.rel (!%p13_p4) target bundleno = 1 (0x1), region = 77 }

// kernel: basic_block_forward.8
= control target key start
LH: loop header
LB: loop body
LE: loop exit
PB: predicated region body
PF: predicated region fallthrough
CT: control target
= control target key end

     0   :  { %vm97_vm0 = vcmask 1041408   ;;  %vm72_vm1 = vcmask 31744   ;;  %s448_s1 = inlined_call_operand.vmem [shape: bf16[4,128], index: 1, kind: input, shape index: {}]   ;;  %s449_s0 = inlined_call_operand.vmem [shape: bf16[128,4], index: 0, kind: input, shape index: {}]   ;;  %s450_s2 = inlined_call_operand.vmem [shape: bf16[128,128], index: 2, kind: output, shape index: {0}]   ;;  %s451_s3 = inlined_call_operand.vmem [shape: f32[1,1,128], index: 3, kind: output, shape index: {1}]   ;;  %s452_s4 = inlined_call_operand.vmem [shape: f32[1,1,128], index: 4, kind: output, shape index: {2}]  }
   0x1   :  { %v31_v0 = vld [vmem:[%s448_s1] sm:$0x3]  ;;  %v296_v3 = vld [vmem:[%s449_s0 + $0x10] sm:$0xff]  ;;  %v295_v6 = vld [vmem:[%s449_s0 + $0x8] sm:$0xff] }
   0x2   :  { %v99_v1 = vsel %vm97_vm0, %v31_v0, 0  ;;  %v294_v2 = vld [vmem:[%s449_s0] sm:$0xff]  ;;  %v300_v5 = vld [vmem:[%s449_s0 + $0x30] sm:$0xff]  ;;  %v297_v7 = vld [vmem:[%s449_s0 + $0x18] sm:$0xff] }
   0x3   :  { %108 = vmatpush.bf16.msra.mxu0 %v99_v1  ;;  %349 = vmatpush.bf16.msra.mxu1 %v99_v1  ;;  %v298_v4 = vld [vmem:[%s449_s0 + $0x20] sm:$0xff]  ;;  %v299_v8 = vld [vmem:[%s449_s0 + $0x28] sm:$0xff]  ;;  %v301_v9 = vld [vmem:[%s449_s0 + $0x38] sm:$0xff] }
   0x4   :  { %350 = vmatpush.bf16.msra.mxu2 %v99_v1  ;;  %351 = vmatpush.bf16.msra.mxu3 %v99_v1 }
   0x6   :  { %286 = vmatmul.msk.bf16.vlgmr.msra.gmra.mxu0 %vm72_vm1, %v294_v2  ;;  %288 = vmatmul.msk.bf16.vlgmr.msra.gmra.mxu1 %vm72_vm1, %v296_v3 }
   0x7   :  { %290 = vmatmul.msk.bf16.vlgmr.msra.gmra.mxu2 %vm72_vm1, %v298_v4  ;;  %292 = vmatmul.msk.bf16.vlgmr.msra.gmra.mxu3 %vm72_vm1, %v300_v5 }
  0x16   :  { %287 = vmatmul.msk.bf16.gmra.mxu0 %vm72_vm1, %v295_v6  ;;  %289 = vmatmul.msk.bf16.gmra.mxu1 %vm72_vm1, %v297_v7 }
  0x17   :  { %291 = vmatmul.msk.bf16.gmra.mxu2 %vm72_vm1, %v299_v8  ;;  %293 = vmatmul.msk.bf16.gmra.mxu3 %vm72_vm1, %v301_v9 }
  0x83   :  { %v110_v10 = vpop.f32.mrf.mxu0  ;;  %v120_v11 = vpop.f32.mrf.mxu1 }
  0x84   :  { %v204_v25 = vmul.f32 %v110_v10, %v110_v10  ;;  %v208_v39 = vmul.f32 %v120_v11, %v120_v11 }
  0x8a   :  { %v130_v12 = vpop.f32.mrf.mxu2  ;;  %v412_v13 = vpop.f32.mrf.mxu3 }
  0x8b   :  { %v112_v14 = vpop.f32.mrf.mxu0  ;;  %v122_v15 = vpop.f32.mrf.mxu1  ;;  %v212_v55 = vmul.f32 %v130_v12, %v130_v12  ;;  %v216_v3 = vmul.f32 %v412_v13, %v412_v13 }
  0x8c   :  { %v305_v16 = vpack.c.bf16 %v112_v14, %v110_v10  ;;  %v315_v17 = vpack.c.bf16 %v122_v15, %v120_v11  ;;  %v205_v24 = vmul.f32 %v112_v14, %v112_v14  ;;  %v182_v27 = vadd.f32 %v112_v14, %v110_v10 }
  0x8d   :  { %v209_v42 = vmul.f32 %v122_v15, %v122_v15 }
  0x8e   :  { %306 = vst [vmem:[%s450_s2] sm:$0xff] %v305_v16   ;;  %v220_v28 = vadd.f32 %v205_v24, %v204_v25 }
  0x8f   :  { %343 = vst [vmem:[%s450_s2 + $0x10] sm:$0xff] %v315_v17  }
  0x92   :  { %v132_v18 = vpop.f32.mrf.mxu2  ;;  %v142_v19 = vpop.f32.mrf.mxu3 }
  0x93   :  { %v115_v20 = vpop.f32.mrf.mxu0  ;;  %v125_v21 = vpop.f32.mrf.mxu1  ;;  %v325_v22 = vpack.c.bf16 %v132_v18, %v130_v12  ;;  %v335_v23 = vpack.c.bf16 %v142_v19, %v412_v13  ;;  %v213_v58 = vmul.f32 %v132_v18, %v132_v18  ;;  %v217_v6 = vmul.f32 %v142_v19, %v142_v19 }
  0x94   :  { %v206_v26 = vmul.f32 %v115_v20, %v115_v20  ;;  %v183_v29 = vadd.f32 %v182_v27, %v115_v20  ;;  %v210_v45 = vmul.f32 %v125_v21, %v125_v21 }
  0x95   :  { %345 = vst [vmem:[%s450_s2 + $0x20] sm:$0xff] %v325_v22  }
  0x96   :  { %347 = vst [vmem:[%s450_s2 + $0x30] sm:$0xff] %v335_v23   ;;  %v221_v32 = vadd.f32 %v220_v28, %v206_v26 }
  0x9a   :  { %v135_v30 = vpop.f32.mrf.mxu2  ;;  %v145_v31 = vpop.f32.mrf.mxu3 }
  0x9b   :  { %v117_v33 = vpop.f32.mrf.mxu0  ;;  %v127_v34 = vpop.f32.mrf.mxu1  ;;  %v214_v62 = vmul.f32 %v135_v30, %v135_v30  ;;  %v218_v10 = vmul.f32 %v145_v31, %v145_v31 }
  0x9c   :  { %v310_v35 = vpack.c.bf16 %v117_v33, %v115_v20  ;;  %v184_v36 = vadd.f32 %v183_v29, %v117_v33  ;;  %v207_v37 = vmul.f32 %v117_v33, %v117_v33  ;;  %v320_v38 = vpack.c.bf16 %v127_v34, %v125_v21 }
  0x9d   :  { %v211_v53 = vmul.f32 %v127_v34, %v127_v34 }
  0x9e   :  { %342 = vst [vmem:[%s450_s2 + $0x8] sm:$0xff] %v310_v35   ;;  %v185_v40 = vadd.f32 %v184_v36, %v120_v11  ;;  %v222_v41 = vadd.f32 %v221_v32, %v207_v37 }
  0x9f   :  { %344 = vst [vmem:[%s450_s2 + $0x18] sm:$0xff] %v320_v38  }
  0xa0   :  { %v223_v43 = vadd.f32 %v222_v41, %v208_v39  ;;  %v186_v44 = vadd.f32 %v185_v40, %v122_v15 }
  0xa2   :  { %v187_v46 = vadd.f32 %v186_v44, %v125_v21  ;;  %v224_v47 = vadd.f32 %v223_v43, %v209_v42  ;;  %v137_v48 = vpop.f32.mrf.mxu2  ;;  %v147_v49 = vpop.f32.mrf.mxu3 }
  0xa3   :  { %v330_v50 = vpack.c.bf16 %v137_v48, %v135_v30  ;;  %v340_v51 = vpack.c.bf16 %v147_v49, %v145_v31  ;;  %v215_v2 = vmul.f32 %v137_v48, %v137_v48  ;;  %v219_v15 = vmul.f32 %v147_v49, %v147_v49 }
  0xa4   :  { %v188_v52 = vadd.f32 %v187_v46, %v127_v34  ;;  %v225_v54 = vadd.f32 %v224_v47, %v210_v45 }
  0xa5   :  { %346 = vst [vmem:[%s450_s2 + $0x28] sm:$0xff] %v330_v50  }
  0xa6   :  { %v189_v56 = vadd.f32 %v188_v52, %v130_v12  ;;  %v226_v57 = vadd.f32 %v225_v54, %v211_v53  ;;  %348 = vst [vmem:[%s450_s2 + $0x38] sm:$0xff] %v340_v51  }
  0xa8   :  { %v227_v59 = vadd.f32 %v226_v57, %v212_v55  ;;  %v190_v60 = vadd.f32 %v189_v56, %v132_v18 }
  0xaa   :  { %v191_v61 = vadd.f32 %v190_v60, %v135_v30  ;;  %v228_v63 = vadd.f32 %v227_v59, %v213_v58 }
  0xac   :  { %v229_v0 = vadd.f32 %v228_v63, %v214_v62  ;;  %v192_v1 = vadd.f32 %v191_v61, %v137_v48 }
  0xae   :  { %v193_v4 = vadd.f32 %v192_v1, %v412_v13  ;;  %v230_v5 = vadd.f32 %v229_v0, %v215_v2 }
  0xb0   :  { %v231_v7 = vadd.f32 %v230_v5, %v216_v3  ;;  %v194_v8 = vadd.f32 %v193_v4, %v142_v19 }
  0xb2   :  { %v195_v9 = vadd.f32 %v194_v8, %v145_v31  ;;  %v232_v11 = vadd.f32 %v231_v7, %v217_v6 }
  0xb4   :  { %v233_v12 = vadd.f32 %v232_v11, %v218_v10  ;;  %v196_v14 = vadd.f32 %v195_v9, %v147_v49 }
  0xb6   :  { %v197_v16 = vrot.slane %v196_v14, 4  ;;  %v234_v17 = vadd.f32 %v233_v12, %v219_v15 }
  0xb8   :  { %v198_v18 = vadd.f32 %v197_v16, %v196_v14  ;;  %v235_v20 = vrot.slane %v234_v17, 4 }
  0xba   :  { %v199_v21 = vrot.slane %v198_v18, 2  ;;  %v236_v22 = vadd.f32 %v235_v20, %v234_v17 }
  0xbc   :  { %v200_v23 = vadd.f32 %v199_v21, %v198_v18  ;;  %v237_v24 = vrot.slane %v236_v22, 2 }
  0xbe   :  { %v201_v25 = vrot.slane %v200_v23, 1  ;;  %v238_v13 = vadd.f32 %v237_v24, %v236_v22 }
  0xc0   :  { %v202_v26 = vadd.f32 %v201_v25, %v200_v23  ;;  %v239_v27 = vrot.slane %v238_v13, 1 }
  0xc2   :  { %203 = vst [vmem:[%s451_s3] sm:$0x1] %v202_v26  ;;  %v240_v19 = vadd.f32 %v239_v27, %v238_v13 }
  0xc4   :  { %241 = vst [vmem:[%s452_s4] sm:$0x1] %v240_v19 }

// kernel: basic_block_forward.7
= control target key start
LH: loop header
LB: loop body
LE: loop exit
PB: predicated region body
PF: predicated region fallthrough
CT: control target
= control target key end

     0   :  { %s2609_s15 = smov 0   ;;  %s3226_s0 = inlined_call_operand.vmem [shape: bf16[2,10,10,128], index: 0, kind: input, shape index: {}]   ;;  %s3227_s1 = inlined_call_operand.vmem [shape: bf16[1152,128], index: 1, kind: input, shape index: {}]   ;;  %s3228_s2 = inlined_call_operand.vmem [shape: bf16[2,64,128], index: 2, kind: output, shape index: {0}]   ;;  %s3229_s3 = inlined_call_operand.vmem [shape: f32[2,1,128], index: 3, kind: output, shape index: {1}]   ;;  %s3230_s4 = inlined_call_operand.vmem [shape: f32[2,1,128], index: 4, kind: output, shape index: {2}]  }
   0x1 LB: > { %s2009_s16 = sadd.s32 4294967295, %s2582_s15   ;;  %p2013_p0 = scmp.ge.s32.totalorder %s2582_s15, 1  ;;  %s2582_s15 = sphi %s2609_s15, %s15_s15  }
   0x2   : > { %p167_p1 = scmp.lt.s32.totalorder %s2582_s15, 3 }
   0x4   : > { %p168_p2 = pnand %p2013_p0, %p167_p1 }
   0x5   : > { %p199_p3 = scmp.lt.s32.totalorder (!%p168_p2), %s2009_s16, 1 }
   0x6   : > { %171 = sbr.rel (%p168_p2) target bundleno = 346 (0x15a), region = 28 }
   0xb   : > { %v2463_v0 = vld [vmem:[%s3227_s1 + $0x78] sm:$0xff]  ;;  %v2462_v2 = vld [vmem:[%s3227_s1 + $0x70] sm:$0xff]  ;;  %s3236_s16 = smov (!%p199_p3, %s2009_s16), 1  ;;  %v2461_v6 = vld [vmem:[%s3227_s1 + $0x68] sm:$0xff]  ;;  %vm247_vm0 = vsmask.f32 3328 }
   0xc   : > { %v2471_v1 = vld [vmem:[%s3227_s1 + $0xb8] sm:$0xff]  ;;  %2551 = vmatpush.bf16.msra.mxu1 %v2463_v0  ;;  %442 = vmatpush.bf16.msra.mxu0 %v2463_v0  ;;  %v2470_v3 = vld [vmem:[%s3227_s1 + $0xb0] sm:$0xff]  ;;  %s2567_s27 = smul.u32 80, %s3236_s16  ;;  %v2469_v7 = vld [vmem:[%s3227_s1 + $0xa8] sm:$0xff]  ;;  %vm248_vm1 = vsmask.f32 7440  ;;  %s211_s5 = scalar_lea.vmem %s3229_s3, %s3236_s16 }
   0xd   : > { %711 = vmatpush.bf16.msra.mxu2 %v2471_v1  ;;  %v2483_v4 = vld [vmem:[%s3227_s1 + $0xf8] sm:$0xff]  ;;  %v2482_v5 = vld [vmem:[%s3227_s1 + $0xf0] sm:$0xff]  ;;  %v2460_v11 = vld [vmem:[%s3227_s1 + $0x60] sm:$0xff]  ;;  %vm596_vm2 = vcmask 1042432   ;;  %vm597_vm3 = vcmask 1046532   ;;  %s214_s8 = scalar_lea.vmem %s3230_s4, %s3236_s16 }
   0xe   : > { %845 = vmatpush.bf16.msra.mxu3 %v2483_v4  ;;  %s2647_s10 = scalar_lea.vmem %s3226_s0, %s2567_s27  ;;  %v2468_v16 = vld [vmem:[%s3227_s1 + $0xa0] sm:$0xff]  ;;  %v2481_v17 = vld [vmem:[%s3227_s1 + $0xe8] sm:$0xff]  ;;  %v2459_v29 = vld [vmem:[%s3227_s1 + $0x58] sm:$0xff] }
   0xf   : > { %v219_v8 = vld [vmem:[%s2647_s10 + $0x20] sm:$0xf]  ;;  %v220_v9 = vld [vmem:[%s2647_s10 + $0x28] sm:$0xf]  ;;  %v2652_v10 = vld [vmem:[%s2647_s10 + $0x24] sm:$0x1] }
  0x10   : > { %2552 = vmatpush.bf16.msra.mxu1 %v2462_v2  ;;  %443 = vmatpush.bf16.msra.mxu0 %v2462_v2  ;;  %v2658_v12 = vld [vmem:[%s2647_s10 + $0x2c] sm:$0x1]  ;;  %v307_v13 = vshrl.u32 %v219_v8, 16  ;;  %v310_v14 = vshll.u32 %v219_v8, 16  ;;  %v321_v15 = vshrl.u32 %v220_v9, 16  ;;  %v324_v18 = vshll.u32 %v220_v9, 16  ;;  %vm2685_vm4 = vmor %vm247_vm0, %vm248_vm1 }
  0x11   : > { %712 = vmatpush.bf16.msra.mxu2 %v2470_v3  ;;  %v215_v19 = vld [vmem:[%s2647_s10] sm:$0xf]  ;;  %v316_v22 = vshll.u32 %v2652_v10, 16  ;;  %v216_v24 = vld [vmem:[%s2647_s10 + $0x8] sm:$0xf]  ;;  %v330_v26 = vshll.u32 %v2658_v12, 16  ;;  %vm2694_vm5 = vmor %vm596_vm2, %vm597_vm3 }
  0x12   : > { %846 = vmatpush.bf16.msra.mxu3 %v2482_v5  ;;  %v309_v20 = vrot.slane %v307_v13, 4  ;;  %v312_v21 = vrot.slane %v310_v14, 5  ;;  %v323_v23 = vrot.slane %v321_v15, 4  ;;  %v326_v25 = vrot.slane %v324_v18, 5  ;;  %v239_v27 = vld [vmem:[%s2647_s10 + $0x4] sm:$0x1] }
  0x13   : > { %v240_v28 = vld [vmem:[%s2647_s10 + $0xc] sm:$0x1]  ;;  %v251_v31 = vshrl.u32 %v215_v19, 16  ;;  %v254_v32 = vshll.u32 %v215_v19, 16  ;;  %v2480_v34 = vld [vmem:[%s3227_s1 + $0xe0] sm:$0xff]  ;;  %v260_v35 = vshll.u32 %v239_v27, 16 }
  0x14   : > { %2553 = vmatpush.bf16.msra.mxu1 %v2461_v6  ;;  %444 = vmatpush.bf16.msra.mxu0 %v2461_v6  ;;  %v313_v30 = vor.u32 %v312_v21, %v309_v20  ;;  %v327_v33 = vor.u32 %v326_v25, %v323_v23  ;;  %v265_v36 = vshrl.u32 %v216_v24, 16  ;;  %v268_v37 = vshll.u32 %v216_v24, 16  ;;  %v572_v38 = vld [vmem:[%s2647_s10] sm:$0xe]  ;;  %v573_v43 = vld [vmem:[%s2647_s10 + $0x8] sm:$0xe] }
  0x15   : > { %713 = vmatpush.bf16.msra.mxu2 %v2469_v7  ;;  %v318_v39 = vrot.slane %v316_v22, 5  ;;  %v253_v40 = vrot.slane %v251_v31, 4  ;;  %v256_v41 = vrot.slane %v254_v32, 5  ;;  %v274_v42 = vshll.u32 %v240_v28, 16  ;;  %v2467_v44 = vld [vmem:[%s3227_s1 + $0x98] sm:$0xff]  ;;  %v2458_v60 = vld [vmem:[%s3227_s1 + $0x50] sm:$0xff] }
  0x16   : > { %847 = vmatpush.bf16.msra.mxu3 %v2481_v17  ;;  %v314_v45 = vrot.slane %v313_v30, 4  ;;  %v332_v46 = vrot.slane %v330_v26, 5  ;;  %v267_v47 = vrot.slane %v265_v36, 4  ;;  %v270_v48 = vrot.slane %v268_v37, 5  ;;  %v2479_v56 = vld [vmem:[%s3227_s1 + $0xd8] sm:$0xff]  ;;  %v2466_v0 = vld [vmem:[%s3227_s1 + $0x90] sm:$0xff] }
  0x17   : > { %v328_v50 = vrot.slane %v327_v33, 4  ;;  %v257_v51 = vor.u32 %v256_v41, %v253_v40  ;;  %v2097_v52 = vrot.slane %v572_v38, 9  ;;  %v601_v53 = vrot.slane %v239_v27, 5  ;;  %v221_v59 = vld [vmem:[%s2647_s10 + $0x30] sm:$0xf]  ;;  %v2457_v14 = vld [vmem:[%s3227_s1 + $0x48] sm:$0xff] }
  0x18   : > { %2554 = vmatpush.bf16.msra.mxu1 %v2460_v11  ;;  %445 = vmatpush.bf16.msra.mxu0 %v2460_v11  ;;  %v262_v54 = vrot.slane %v260_v35, 5  ;;  %v271_v55 = vor.u32 %v270_v48, %v267_v47  ;;  %v2098_v58 = vrot.slane %v573_v43, 9  ;;  %v276_v62 = vrot.slane %v274_v42, 5  ;;  %v222_v3 = vld [vmem:[%s2647_s10 + $0x38] sm:$0xf]  ;;  %v2478_v11 = vld [vmem:[%s3227_s1 + $0xd0] sm:$0xff] }
  0x19   : > { %714 = vmatpush.bf16.msra.mxu2 %v2468_v16  ;;  %v258_v61 = vrot.slane %v257_v51, 4  ;;  %v605_v63 = vrot.slane %v240_v28, 5  ;;  %v319_v1 = vsel %vm2685_vm4, %v314_v45, %v318_v39  ;;  %v333_v4 = vsel %vm2685_vm4, %v328_v50, %v332_v46  ;;  %v217_v7 = vld [vmem:[%s2647_s10 + $0x10] sm:$0xf]  ;;  %v2465_v19 = vld [vmem:[%s3227_s1 + $0x88] sm:$0xff]  ;;  %v2456_v24 = vld [vmem:[%s3227_s1 + $0x40] sm:$0xff] }
  0x1a   : > { %848 = vmatpush.bf16.msra.mxu3 %v2480_v34  ;;  %v272_v2 = vrot.slane %v271_v55, 4  ;;  %v602_v5 = vsel %vm2694_vm5, %v2097_v52, %v601_v53  ;;  %v335_v6 = vshrl.u32 %v221_v59, 16  ;;  %v338_v13 = vshll.u32 %v221_v59, 16  ;;  %v218_v22 = vld [vmem:[%s2647_s10 + $0x18] sm:$0xf]  ;;  %v2477_v31 = vld [vmem:[%s3227_s1 + $0xc8] sm:$0xff] }
  0x1b   : > { %v263_v8 = vsel %vm2685_vm4, %v258_v61, %v262_v54  ;;  %v606_v9 = vsel %vm2694_vm5, %v2098_v58, %v605_v63  ;;  %v2723_v15 = vunpack.c.l.b16 %v319_v1  ;;  %v349_v17 = vshrl.u32 %v222_v3, 16  ;;  %v2741_v32 = vld [vmem:[%s2647_s10 + $0x34] sm:$0x1]  ;;  %v2744_v36 = vld [vmem:[%s2647_s10 + $0x3c] sm:$0x1]  ;;  %v2464_v42 = vld [vmem:[%s3227_s1 + $0x80] sm:$0xff] }
  0x1c   : > { %2555 = vmatpush.bf16.msra.mxu1 %v2459_v29  ;;  %446 = vmatpush.bf16.msra.mxu0 %v2459_v29  ;;  %v277_v16 = vsel %vm2685_vm4, %v272_v2, %v276_v62  ;;  %v383_v18 = vunpack.c.l.b16 %v333_v4  ;;  %v647_v20 = vunpack.c.l.b16 %v602_v5  ;;  %v352_v21 = vshll.u32 %v222_v3, 16  ;;  %v2455_v29 = vld [vmem:[%s3227_s1 + $0x38] sm:$0xff]  ;;  %v2751_v43 = vld [vmem:[%s2647_s10 + $0x14] sm:$0x1]  ;;  %v2147_v62 = vld [vmem:[%s2647_s10 + $0x8] sm:$0xf] }
  0x1d   : > { %715 = vmatpush.bf16.msra.mxu2 %v2467_v44  ;;  %v279_v23 = vshrl.u32 %v217_v7, 16  ;;  %v378_v25 = vunpack.c.l.b16 %v263_v8  ;;  %v648_v26 = vunpack.c.l.b16 %v606_v9  ;;  %v337_v27 = vrot.slane %v335_v6, 4  ;;  %v2754_v44 = vld [vmem:[%s2647_s10 + $0x1c] sm:$0x1]  ;;  %v2472_v63 = vld [vmem:[%s2647_s10 + $0xc] sm:$0xf0] }
  0x1e   : > { %849 = vmatpush.bf16.msra.mxu3 %v2479_v56  ;;  %v282_v28 = vshll.u32 %v217_v7, 16  ;;  %v379_v30 = vunpack.c.l.b16 %v277_v16  ;;  %v340_v33 = vrot.slane %v338_v13, 5  ;;  %v351_v34 = vrot.slane %v349_v17, 4  ;;  %v2491_v45 = vld [vmem:[%s3227_s1 + $0x138] sm:$0xff]  ;;  %v2476_v56 = vld [vmem:[%s3227_s1 + $0xc0] sm:$0xff]  ;;  %v2490_v1 = vld [vmem:[%s3227_s1 + $0x130] sm:$0xff] }
  0x1f   : > { %v354_v35 = vrot.slane %v352_v21, 5  ;;  %v281_v37 = vrot.slane %v279_v23, 4  ;;  %v293_v39 = vshrl.u32 %v218_v22, 16  ;;  %v296_v40 = vshll.u32 %v218_v22, 16  ;;  %v2511_v48 = vld [vmem:[%s3227_s1 + $0x1b8] sm:$0xff]  ;;  %v2510_v6 = vld [vmem:[%s3227_s1 + $0x1b0] sm:$0xff] }
  0x20   : > { %2556 = vmatpush.bf16.msra.mxu1 %v2458_v60  ;;  %447 = vmatpush.bf16.msra.mxu0 %v2458_v60  ;;  %v284_v38 = vrot.slane %v282_v28, 5  ;;  %v388_v41 = vpack.c.b16 %v383_v18, %v2723_v15  ;;  %v655_v46 = vpack.c.b16 %v648_v26, %v647_v20  ;;  %v344_v47 = vshll.u32 %v2741_v32, 16  ;;  %v2519_v2 = vld [vmem:[%s3227_s1 + $0x1f8] sm:$0xff]  ;;  %v574_v4 = vld [vmem:[%s2647_s10 + $0x10] sm:$0xe]  ;;  %v2509_v26 = vld [vmem:[%s3227_s1 + $0x1a8] sm:$0xff] }
  0x21   : > { %716 = vmatpush.bf16.msra.mxu2 %v2466_v0  ;;  %v295_v50 = vrot.slane %v293_v39, 4  ;;  %v298_v51 = vrot.slane %v296_v40, 5  ;;  %v386_v52 = vpack.c.b16 %v379_v30, %v378_v25  ;;  %v341_v53 = vor.u32 %v340_v33, %v337_v27  ;;  %v2454_v0 = vld [vmem:[%s3227_s1 + $0x30] sm:$0xff]  ;;  %v575_v5 = vld [vmem:[%s2647_s10 + $0x18] sm:$0xe]  ;;  %v2489_v25 = vld [vmem:[%s3227_s1 + $0x128] sm:$0xff] }
  0x22   : > { %850 = vmatpush.bf16.msra.mxu3 %v2478_v11  ;;  %v355_v54 = vor.u32 %v354_v35, %v351_v34  ;;  %v358_v55 = vshll.u32 %v2744_v36, 16  ;;  %v285_v58 = vor.u32 %v284_v38, %v281_v37  ;;  %v288_v59 = vshll.u32 %v2751_v43, 16  ;;  %v2193_v13 = vld [vmem:[%s2647_s10 + $0x8] sm:$0xf]  ;;  %v2195_v18 = vld [vmem:[%s2647_s10 + $0x10] sm:$0xf] }
  0x23   : > { %v299_v60 = vor.u32 %v298_v51, %v295_v50  ;;  %v302_v61 = vshll.u32 %v2754_v44, 16  ;;  %v346_v3 = vrot.slane %v344_v47, 5  ;;  %v342_v7 = vrot.slane %v341_v53, 4  ;;  %v2452_v37 = vld [vmem:[%s3227_s1 + $0x20] sm:$0xff]  ;;  %v2517_v40 = vld [vmem:[%s3227_s1 + $0x1e8] sm:$0xff] }
  0x24   : > { %2557 = vmatpush.bf16.msra.mxu1 %v2457_v14  ;;  %448 = vmatpush.bf16.msra.mxu0 %v2457_v14  ;;  %v356_v8 = vrot.slane %v355_v54, 4  ;;  %v360_v9 = vrot.slane %v358_v55, 5  ;;  %v2148_v11 = vor.u32 %v2472_v63, %v2147_v62  ;;  %v286_v14 = vrot.slane %v285_v58, 4  ;;  %v2826_v47 = vld [vmem:[%s2647_s10 + $0xc] sm:$0x1]  ;;  %v2451_v55 = vld [vmem:[%s3227_s1 + $0x18] sm:$0xff] }
  0x25   : > { %717 = vmatpush.bf16.msra.mxu2 %v2465_v19  ;;  %v290_v15 = vrot.slane %v288_v59, 5  ;;  %v300_v16 = vrot.slane %v299_v60, 4  ;;  %v304_v17 = vrot.slane %v302_v61, 5  ;;  %v2453_v19 = vld [vmem:[%s3227_s1 + $0x28] sm:$0xff]  ;;  %v2099_v20 = vrot.slane %v574_v4, 9  ;;  %v2487_v58 = vld [vmem:[%s3227_s1 + $0x118] sm:$0xff] }
  0x26   : > { %851 = vmatpush.bf16.msra.mxu3 %v2477_v31  ;;  %v609_v21 = vrot.slane %v2751_v43, 5  ;;  %v2100_v22 = vrot.slane %v575_v5, 9  ;;  %v613_v23 = vrot.slane %v2754_v44, 5  ;;  %v347_v27 = vsel %vm2685_vm4, %v342_v7, %v346_v3  ;;  %v2488_v43 = vld [vmem:[%s3227_s1 + $0x120] sm:$0xff]  ;;  %v2151_v62 = vld [vmem:[%s2647_s10 + $0x18] sm:$0xf] }
  0x27   : > { %v361_v28 = vsel %vm2685_vm4, %v356_v8, %v360_v9  ;;  %v902_v30 = vshll.u32 %v2193_v13, 16  ;;  %v291_v31 = vsel %vm2685_vm4, %v286_v14, %v290_v15  ;;  %v305_v33 = vsel %vm2685_vm4, %v300_v16, %v304_v17  ;;  %v2508_v44 = vld [vmem:[%s3227_s1 + $0x1a0] sm:$0xff]  ;;  %v577_v5 = vld [vmem:[%s2647_s10 + $0x28] sm:$0xe]  ;;  %v2486_v7 = vld [vmem:[%s3227_s1 + $0x110] sm:$0xff] }
  0x28   : > { %2558 = vmatpush.bf16.msra.mxu1 %v2456_v24  ;;  %449 = vmatpush.bf16.msra.mxu0 %v2456_v24  ;;  %v2518_v24 = vld [vmem:[%s3227_s1 + $0x1f0] sm:$0xff]  ;;  %v913_v34 = vshrl.u32 %v2195_v18, 16  ;;  %v916_v35 = vshll.u32 %v2195_v18, 16  ;;  %v610_v38 = vsel %vm2694_vm5, %v2099_v20, %v609_v21  ;;  %v614_v39 = vsel %vm2694_vm5, %v2100_v22, %v613_v23  ;;  %v2473_v63 = vld [vmem:[%s2647_s10 + $0x1c] sm:$0xf0]  ;;  %v2507_v17 = vld [vmem:[%s3227_s1 + $0x198] sm:$0xff] }
  0x29   : > { %718 = vmatpush.bf16.msra.mxu2 %v2464_v42  ;;  %v385_v42 = vunpack.c.l.b16 %v361_v28  ;;  %v904_v50 = vrot.slane %v902_v30, 5  ;;  %v649_v51 = vunpack.c.l.b16 %v610_v38  ;;  %v908_v59 = vshll.u32 %v2826_v47, 16  ;;  %v2197_v20 = vld [vmem:[%s2647_s10 + $0x18] sm:$0xf]  ;;  %v2516_v21 = vld [vmem:[%s3227_s1 + $0x1e0] sm:$0xff]  ;;  %v2506_v23 = vld [vmem:[%s3227_s1 + $0x190] sm:$0xff] }
  0x2a   : > { %852 = vmatpush.bf16.msra.mxu3 %v2476_v56  ;;  %v915_v53 = vrot.slane %v913_v34, 4  ;;  %v918_v54 = vrot.slane %v916_v35, 5  ;;  %v2832_v56 = vld [vmem:[%s2647_s10 + $0x14] sm:$0x1]  ;;  %v2152_v8 = vor.u32 %v2473_v63, %v2151_v62  ;;  %v617_v14 = vrot.slane %v2652_v10, 5  ;;  %v2449_v10 = vld [vmem:[%s3227_s1 + $0x8] sm:$0xff] }
  0x2b   : > { %460 = vmatmul.bf16.vlgmr.msra.gmra.mxu1 %v388_v41  ;;  %450 = vmatmul.bf16.vlgmr.msra.gmra.mxu0 %v386_v52  ;;  %v384_v41 = vunpack.c.l.b16 %v347_v27  ;;  %v650_v52 = vunpack.c.l.b16 %v614_v39  ;;  %v922_v4 = vshll.u32 %v2832_v56, 16  ;;  %v910_v9 = vrot.slane %v908_v59, 5  ;;  %v2199_v22 = vld [vmem:[%s2647_s10 + $0x20] sm:$0xf]  ;;  %v2444_v39 = vld [vmem:[%s2647_s10 + $0x4] sm:$0xf0] }
  0x2c   : > { %543 = vmatpush.bf16.msrb.mxu1 %v2455_v29  ;;  %1090 = vmatpush.bf16.msrb.mxu0 %v2491_v45  ;;  %v899_v29 = vshrl.u32 %v2193_v13, 16  ;;  %v380_v45 = vunpack.c.l.b16 %v291_v31  ;;  %v919_v3 = vor.u32 %v918_v54, %v915_v53  ;;  %v2102_v15 = vrot.slane %v577_v5, 9  ;;  %v2448_v34 = vld [vmem:[%s3227_s1] sm:$0xff]  ;;  %v2498_v53 = vld [vmem:[%s3227_s1 + $0x170] sm:$0xff]  ;;  %v579_v5 = vld [vmem:[%s2647_s10 + $0x38] sm:$0xe] }
  0x2d   : > { %1397 = vmatpush.bf16.msrb.mxu2 %v2511_v48  ;;  %853 = vmatmul.bf16.vlgmr.msra.gmra.mxu3 %v2148_v11  ;;  %v389_v60 = vpack.c.b16 %v385_v42, %v384_v41  ;;  %v621_v16 = vrot.slane %v2658_v12, 5  ;;  %v2485_v12 = vld [vmem:[%s3227_s1 + $0x108] sm:$0xff]  ;;  %v927_v28 = vshrl.u32 %v2197_v20, 16  ;;  %v930_v30 = vshll.u32 %v2197_v20, 16  ;;  %v2051_v35 = vld [vmem:[%s2647_s10] sm:$0xf] }
  0x2e   : > { %719 = vmatmul.bf16.vlgmr.msra.gmra.mxu2 %v655_v46  ;;  %1642 = vmatpush.bf16.msrb.mxu3 %v2519_v2  ;;  %v381_v46 = vunpack.c.l.b16 %v305_v33  ;;  %v901_v48 = vrot.slane %v899_v29, 4  ;;  %v656_v2 = vpack.c.b16 %v650_v52, %v649_v51  ;;  %v920_v18 = vrot.slane %v919_v3, 4  ;;  %v2484_v38 = vld [vmem:[%s3227_s1 + $0x100] sm:$0xff]  ;;  %v2474_v62 = vld [vmem:[%s2647_s10 + $0x2c] sm:$0xf0] }
  0x2f   : > { %v622_v27 = vsel %vm2694_vm5, %v2102_v15, %v621_v16  ;;  %v941_v31 = vshrl.u32 %v2199_v22, 16  ;;  %v944_v33 = vshll.u32 %v2199_v22, 16  ;;  %v2052_v54 = vor.u32 %v2444_v39, %v2051_v35  ;;  %v2201_v3 = vld [vmem:[%s2647_s10 + $0x28] sm:$0xf]  ;;  %v2504_v22 = vld [vmem:[%s3227_s1 + $0x180] sm:$0xff] }
  0x30   : > { %544 = vmatpush.bf16.msrb.mxu1 %v2454_v0  ;;  %1091 = vmatpush.bf16.msrb.mxu0 %v2490_v1  ;;  %v387_v61 = vpack.c.b16 %v381_v46, %v380_v45  ;;  %v905_v0 = vor.u32 %v904_v50, %v901_v48  ;;  %v576_v1 = vld [vmem:[%s2647_s10 + $0x20] sm:$0xe]  ;;  %v2896_v45 = vld [vmem:[%s2647_s10 + $0x1c] sm:$0x1]  ;;  %v2899_v46 = vld [vmem:[%s2647_s10 + $0x24] sm:$0x1] }
  0x31   : > { %1398 = vmatpush.bf16.msrb.mxu2 %v2510_v6  ;;  %v2450_v6 = vld [vmem:[%s3227_s1 + $0x10] sm:$0xff]  ;;  %v2101_v11 = vrot.slane %v576_v1, 9  ;;  %v929_v48 = vrot.slane %v927_v28, 4  ;;  %v932_v50 = vrot.slane %v930_v30, 5  ;;  %v943_v51 = vrot.slane %v941_v31, 4  ;;  %v2928_v15 = vld [vmem:[%s3227_s1 + $0x228] sm:$0xff] }
  0x32   : > { %1643 = vmatpush.bf16.msrb.mxu3 %v2518_v24  ;;  %v906_v13 = vrot.slane %v905_v0, 4  ;;  %v2515_v24 = vld [vmem:[%s3227_s1 + $0x1d8] sm:$0xff]  ;;  %v946_v52 = vrot.slane %v944_v33, 5  ;;  %v950_v59 = vshll.u32 %v2899_v46, 16  ;;  %v2912_v1 = vld [vmem:[%s3227_s1 + $0x230] sm:$0xff]  ;;  %v955_v16 = vshrl.u32 %v2201_v3, 16 }
  0x33   : > { %v933_v63 = vor.u32 %v932_v50, %v929_v48  ;;  %v625_v20 = vrot.slane %v2741_v32, 5  ;;  %v2513_v32 = vld [vmem:[%s3227_s1 + $0x1c8] sm:$0xff]  ;;  %v2952_v28 = vld [vmem:[%s3227_s1 + $0x220] sm:$0xff]  ;;  %v2495_v31 = vld [vmem:[%s3227_s1 + $0x158] sm:$0xff] }
  0x34   : > { %545 = vmatpush.bf16.msrb.mxu1 %v2453_v19  ;;  %1092 = vmatpush.bf16.msrb.mxu0 %v2489_v25  ;;  %v924_v19 = vrot.slane %v922_v4, 5  ;;  %v911_v25 = vsel %vm2685_vm4, %v906_v13, %v910_v9  ;;  %v947_v0 = vor.u32 %v946_v52, %v943_v51  ;;  %v578_v4 = vld [vmem:[%s2647_s10 + $0x30] sm:$0xe]  ;;  %v952_v9 = vrot.slane %v950_v59, 5  ;;  %v2962_v33 = vld [vmem:[%s2647_s10 + $0x2c] sm:$0x1] }
  0x35   : > { %1399 = vmatpush.bf16.msrb.mxu2 %v2509_v26  ;;  %v618_v26 = vsel %vm2694_vm5, %v2101_v11, %v617_v14  ;;  %v2203_v11 = vld [vmem:[%s2647_s10 + $0x30] sm:$0xf]  ;;  %v934_v13 = vrot.slane %v933_v63, 4  ;;  %v2965_v39 = vld [vmem:[%s2647_s10 + $0x34] sm:$0x1]  ;;  %v964_v52 = vshll.u32 %v2962_v33, 16 }
  0x36   : > { %1644 = vmatpush.bf16.msrb.mxu3 %v2517_v40  ;;  %v925_v29 = vsel %vm2685_vm4, %v920_v18, %v924_v19  ;;  %v1026_v40 = vunpack.c.l.b16 %v911_v25  ;;  %v651_v42 = vunpack.c.l.b16 %v618_v26  ;;  %v948_v14 = vrot.slane %v947_v0, 4  ;;  %v2514_v18 = vld [vmem:[%s3227_s1 + $0x1d0] sm:$0xff]  ;;  %v2347_v51 = vld [vmem:[%s2647_s10 + $0x18] sm:$0xf]  ;;  %v2475_v63 = vld [vmem:[%s2647_s10 + $0x3c] sm:$0xf0] }
  0x37   : > { %v1027_v41 = vunpack.c.l.b16 %v925_v29  ;;  %v2103_v19 = vrot.slane %v578_v4, 9  ;;  %v957_v26 = vrot.slane %v955_v16, 4  ;;  %v978_v59 = vshll.u32 %v2965_v39, 16  ;;  %v2205_v0 = vld [vmem:[%s2647_s10 + $0x38] sm:$0xf] }
  0x38   : > { %546 = vmatpush.bf16.msrb.mxu1 %v2452_v37  ;;  %1093 = vmatpush.bf16.msrb.mxu0 %v2488_v43  ;;  %v2499_v37 = vld [vmem:[%s3227_s1 + $0x178] sm:$0xff]  ;;  %v652_v43 = vunpack.c.l.b16 %v622_v27  ;;  %v953_v25 = vsel %vm2685_vm4, %v948_v14, %v952_v9 }
  0x39   : > { %1400 = vmatpush.bf16.msrb.mxu2 %v2508_v44  ;;  %v2893_v44 = vld [vmem:[%s3227_s1 + $0x238] sm:$0xff]  ;;  %v626_v29 = vsel %vm2694_vm5, %v2103_v19, %v625_v20  ;;  %v980_v16 = vrot.slane %v978_v59, 5  ;;  %v2512_v20 = vld [vmem:[%s3227_s1 + $0x1c0] sm:$0xff] }
  0x3a   : > { %1645 = vmatpush.bf16.msrb.mxu3 %v2516_v21  ;;  %v2104_v21 = vrot.slane %v579_v5, 9  ;;  %v2983_v5 = vld [vmem:[%s2647_s10 + $0x14] sm:$0x1]  ;;  %v2995_v19 = vld [vmem:[%s3227_s1 + $0x218] sm:$0xff] }
  0x3b   : > { %465 = vmatmul.bf16.gmra.mxu1 %v389_v60  ;;  %455 = vmatmul.bf16.gmra.mxu0 %v387_v61  ;;  %v657_v60 = vpack.c.b16 %v652_v43, %v651_v42  ;;  %v2155_v61 = vld [vmem:[%s2647_s10 + $0x28] sm:$0xf]  ;;  %v2445_v42 = vld [vmem:[%s2647_s10 + $0x14] sm:$0xf0]  ;;  %v653_v43 = vunpack.c.l.b16 %v626_v29 }
  0x3c   : > { %547 = vmatpush.bf16.msrb.mxu1 %v2451_v55  ;;  %1094 = vmatpush.bf16.msrb.mxu0 %v2487_v58  ;;  %v1034_v55 = vpack.c.b16 %v1027_v41, %v1026_v40  ;;  %v936_v58 = vshll.u32 %v2896_v45, 16  ;;  %v2345_v40 = vld [vmem:[%s2647_s10 + $0x10] sm:$0xf]  ;;  %v2241_v29 = vld [vmem:[%s2647_s10 + $0x8] sm:$0xe] }
  0x3d   : > { %1401 = vmatpush.bf16.msrb.mxu2 %v2507_v17  ;;  %858 = vmatmul.bf16.gmra.mxu3 %v2152_v8  ;;  %v958_v17 = vshll.u32 %v2201_v3, 16  ;;  %v2055_v41 = vld [vmem:[%s2647_s10 + $0x10] sm:$0xf] }
  0x3e   : > { %724 = vmatmul.bf16.gmra.mxu2 %v656_v2  ;;  %1646 = vmatpush.bf16.msrb.mxu3 %v2515_v24  ;;  %v2497_v2 = vld [vmem:[%s3227_s1 + $0x168] sm:$0xff]  ;;  %v938_v8 = vrot.slane %v936_v58, 5  ;;  %v972_v24 = vshll.u32 %v2203_v11, 16 }
  0x3f   : > { %v960_v27 = vrot.slane %v958_v17, 5  ;;  %v2207_v17 = vld [vmem:[%s2647_s10 + $0x40] sm:$0xf] }
  0x40   : > { %548 = vmatpush.bf16.msrb.mxu1 %v2450_v6  ;;  %1095 = vmatpush.bf16.msrb.mxu0 %v2486_v7  ;;  %v2505_v6 = vld [vmem:[%s3227_s1 + $0x188] sm:$0xff]  ;;  %v2156_v7 = vor.u32 %v2474_v62, %v2155_v61  ;;  %v974_v35 = vrot.slane %v972_v24, 5  ;;  %v2056_v61 = vor.u32 %v2445_v42, %v2055_v41  ;;  %v3021_v42 = vld [vmem:[%s2647_s10 + $0x3c] sm:$0x1] }
  0x41   : > { %1402 = vmatpush.bf16.msrb.mxu2 %v2506_v23  ;;  %v969_v23 = vshrl.u32 %v2203_v11, 16  ;;  %v961_v50 = vor.u32 %v960_v27, %v957_v26  ;;  %v3008_v27 = vld [vmem:[%s3227_s1 + $0x210] sm:$0xff] }
  0x42   : > { %1647 = vmatpush.bf16.msrb.mxu3 %v2514_v18  ;;  %v983_v18 = vshrl.u32 %v2205_v0, 16 }
  0x43   : > { %v962_v4 = vrot.slane %v961_v50, 4 }
  0x44   : > { %549 = vmatpush.bf16.msrb.mxu1 %v2449_v10  ;;  %1096 = vmatpush.bf16.msrb.mxu0 %v2485_v12  ;;  %v629_v10 = vrot.slane %v2744_v36, 5  ;;  %v2496_v12 = vld [vmem:[%s3227_s1 + $0x160] sm:$0xff]  ;;  %v939_v36 = vsel %vm2685_vm4, %v934_v13, %v938_v8 }
  0x45   : > { %1403 = vmatpush.bf16.msrb.mxu2 %v2505_v6  ;;  %v966_v6 = vrot.slane %v964_v52, 5 }
  0x46   : > { %v630_v30 = vsel %vm2694_vm5, %v2104_v21, %v629_v10  ;;  %1648 = vmatpush.bf16.msrb.mxu3 %v2513_v32  ;;  %v986_v21 = vshll.u32 %v2205_v0, 16  ;;  %v1157_v32 = vrot.slane %v2832_v56, 5  ;;  %v985_v56 = vrot.slane %v983_v18, 4 }
  0x47   : > { %v654_v48 = vunpack.c.l.b16 %v630_v30 }
  0x48   : > { %550 = vmatpush.bf16.msrb.mxu1 %v2448_v34  ;;  %1097 = vmatpush.bf16.msrb.mxu0 %v2484_v38  ;;  %v971_v34 = vrot.slane %v969_v23, 4  ;;  %v1029_v38 = vunpack.c.l.b16 %v953_v25  ;;  %v1153_v23 = vrot.slane %v2826_v47, 5  ;;  %v1000_v25 = vshll.u32 %v2207_v17, 16 }
  0x49   : > { %1404 = vmatpush.bf16.msrb.mxu2 %v2504_v22  ;;  %v658_v3 = vpack.c.b16 %v654_v48, %v653_v43  ;;  %v1460_v22 = vshll.u32 %v2983_v5, 16  ;;  %v967_v47 = vsel %vm2685_vm4, %v962_v4, %v966_v6  ;;  %v2299_v4 = vld [vmem:[%s2647_s10 + $0x10] sm:$0xf] }
  0x4a   : > { %v975_v58 = vor.u32 %v974_v35, %v971_v34  ;;  %1649 = vmatpush.bf16.msrb.mxu3 %v2512_v20  ;;  %v2242_v34 = vld [vmem:[%s2647_s10 + $0x10] sm:$0xe]  ;;  %v2249_v35 = vrot.slane %v2241_v29, 9  ;;  %v1002_v52 = vrot.slane %v1000_v25, 5 }
  0x4b   : > { %551 = vmatmul.bf16.vlgmr.msrb.gmra.mxu1 %v2052_v54  ;;  %1098 = vmatmul.bf16.vlgmr.msrb.gmra.mxu0 %v1034_v55  ;;  %v1454_v54 = vshll.u32 %v2345_v40, 16  ;;  %v1465_v55 = vshrl.u32 %v2347_v51, 16  ;;  %v2250_v41 = vrot.slane %v2242_v34, 9  ;;  %v2520_v34 = vld [vmem:[%s3227_s1 + $0x200] sm:$0xff] }
  0x4c   : > { %1263 = vmatpush.bf16.msra.mxu1 %v2499_v37  ;;  %1815 = vmatpush.bf16.msra.mxu0 %v2893_v44  ;;  %v1028_v37 = vunpack.c.l.b16 %v939_v36  ;;  %v976_v14 = vrot.slane %v975_v58, 4  ;;  %v997_v36 = vshrl.u32 %v2207_v17, 16  ;;  %v1154_v50 = vsel %vm2694_vm5, %v2249_v35, %v1153_v23  ;;  %v3054_v23 = vld [vmem:[%s2647_s10 + $0x2c] sm:$0x1] }
  0x4d   : > { %863 = vmatmul.bf16.gmra.mxu3 %v2156_v7  ;;  %2559 = vmatpush.bf16.msra.mxu2 %v2893_v44  ;;  %v2159_v44 = vld [vmem:[%s2647_s10 + $0x38] sm:$0xf]  ;;  %v2986_v7 = vld [vmem:[%s2647_s10 + $0x1c] sm:$0x1]  ;;  %v1456_v9 = vrot.slane %v1454_v54, 5  ;;  %v1467_v11 = vrot.slane %v1465_v55, 4  ;;  %v1199_v54 = vunpack.c.l.b16 %v1154_v50  ;;  %v1030_v58 = vunpack.c.l.b16 %v967_v47 }
  0x4e   : > { %729 = vmatmul.bf16.gmra.mxu2 %v657_v60  ;;  %v2494_v60 = vld [vmem:[%s3227_s1 + $0x150] sm:$0xff]  ;;  %v1035_v62 = vpack.c.b16 %v1029_v38, %v1028_v37  ;;  %v2160_v13 = vor.u32 %v2475_v63, %v2159_v44  ;;  %v1474_v24 = vshll.u32 %v2986_v7, 16  ;;  %v981_v30 = vsel %vm2685_vm4, %v976_v14, %v980_v16  ;;  %v2059_v55 = vld [vmem:[%s2647_s10 + $0x20] sm:$0xf]  ;;  %v2446_v44 = vld [vmem:[%s2647_s10 + $0x24] sm:$0xf0] }
  0x4f   : > { %v988_v37 = vrot.slane %v986_v21, 5  ;;  %v1031_v59 = vunpack.c.l.b16 %v981_v30  ;;  %v992_v63 = vshll.u32 %v3021_v42, 16  ;;  %v2060_v18 = vor.u32 %v2446_v44, %v2059_v55  ;;  %v2063_v55 = vld [vmem:[%s2647_s10 + $0x30] sm:$0xf] }
  0x50   : > { %1264 = vmatpush.bf16.msra.mxu1 %v2498_v53  ;;  %1816 = vmatpush.bf16.msra.mxu0 %v2912_v1  ;;  %v1451_v53 = vshrl.u32 %v2345_v40, 16  ;;  %v1462_v40 = vrot.slane %v1460_v22, 5  ;;  %v1476_v48 = vrot.slane %v1474_v24, 5 }
  0x51   : > { %2560 = vmatpush.bf16.msra.mxu2 %v2912_v1  ;;  %v2493_v1 = vld [vmem:[%s3227_s1 + $0x148] sm:$0xff] }
  0x52   : > { %v1453_v8 = vrot.slane %v1451_v53, 4  ;;  %v1158_v53 = vsel %vm2694_vm5, %v2250_v41, %v1157_v32 }
  0x54   : > { %1265 = vmatpush.bf16.msra.mxu1 %v2497_v2  ;;  %1817 = vmatpush.bf16.msra.mxu0 %v2928_v15  ;;  %v1468_v2 = vshll.u32 %v2347_v51, 16  ;;  %v1457_v10 = vor.u32 %v1456_v9, %v1453_v8  ;;  %v999_v51 = vrot.slane %v997_v36, 4 }
  0x55   : > { %2561 = vmatpush.bf16.msra.mxu2 %v2928_v15  ;;  %v2521_v15 = vld [vmem:[%s3227_s1 + $0x208] sm:$0xff] }
  0x56   : > { %v1458_v38 = vrot.slane %v1457_v10, 4 }
  0x58   : > { %1266 = vmatpush.bf16.msra.mxu1 %v2496_v12  ;;  %1818 = vmatpush.bf16.msra.mxu0 %v2952_v28  ;;  %v1470_v12 = vrot.slane %v1468_v2, 5  ;;  %v1463_v0 = vsel %vm2685_vm4, %v1458_v38, %v1462_v40  ;;  %v2349_v2 = vld [vmem:[%s2647_s10 + $0x20] sm:$0xf] }
  0x59   : > { %2562 = vmatpush.bf16.msra.mxu2 %v2952_v28  ;;  %v1479_v9 = vshrl.u32 %v2349_v2, 16  ;;  %v1003_v28 = vor.u32 %v1002_v52, %v999_v51  ;;  %v1578_v10 = vunpack.c.l.b16 %v1463_v0  ;;  %v2244_v38 = vld [vmem:[%s2647_s10 + $0x20] sm:$0xe]  ;;  %v1161_v52 = vrot.slane %v2896_v45, 5 }
  0x5a   : > { %v1471_v26 = vor.u32 %v1470_v12, %v1467_v11  ;;  %v1482_v11 = vshll.u32 %v2349_v2, 16  ;;  %v3051_v12 = vld [vmem:[%s2647_s10 + $0x24] sm:$0x1] }
  0x5b   : > { %556 = vmatmul.bf16.gmra.mxu1 %v2056_v61  ;;  %1103 = vmatmul.bf16.gmra.mxu0 %v1035_v62  ;;  %v1200_v61 = vunpack.c.l.b16 %v1158_v53  ;;  %v989_v62 = vor.u32 %v988_v37, %v985_v56  ;;  %v1481_v20 = vrot.slane %v1479_v9, 4  ;;  %v1004_v29 = vrot.slane %v1003_v28, 4  ;;  %v2243_v37 = vld [vmem:[%s2647_s10 + $0x18] sm:$0xe] }
  0x5c   : > { %1267 = vmatpush.bf16.msra.mxu1 %v2495_v31  ;;  %1819 = vmatpush.bf16.msra.mxu0 %v2995_v19  ;;  %v2492_v31 = vld [vmem:[%s3227_s1 + $0x140] sm:$0xff]  ;;  %v1472_v43 = vrot.slane %v1471_v26, 4  ;;  %v1484_v21 = vrot.slane %v1482_v11, 5  ;;  %v994_v26 = vrot.slane %v992_v63, 5  ;;  %v1488_v56 = vshll.u32 %v3051_v12, 16 }
  0x5d   : > { %868 = vmatmul.bf16.gmra.mxu3 %v2160_v13  ;;  %v3045_v8 = vpack.c.b16 %v1200_v61, %v1199_v54  ;;  %v2500_v13 = vld [vmem:[%s2647_s10 + $0x14] sm:$0xf0]  ;;  %2563 = vmatpush.bf16.msra.mxu2 %v2995_v19  ;;  %v990_v25 = vrot.slane %v989_v62, 4  ;;  %v1502_v19 = vshll.u32 %v3054_v23, 16  ;;  %v2251_v50 = vrot.slane %v2243_v37, 9 }
  0x5e   : > { %734 = vmatmul.bf16.gmra.mxu2 %v658_v3  ;;  %v2351_v3 = vld [vmem:[%s2647_s10 + $0x28] sm:$0xf]  ;;  %v1477_v6 = vsel %vm2685_vm4, %v1472_v43, %v1476_v48  ;;  %v2300_v36 = vor.u32 %v2500_v13, %v2299_v4  ;;  %v1485_v30 = vor.u32 %v1484_v21, %v1481_v20  ;;  %v1490_v43 = vrot.slane %v1488_v56, 5  ;;  %v2393_v63 = vld [vmem:[%s2647_s10 + $0x10] sm:$0xe] }
  0x5f   : > { %v1493_v16 = vshrl.u32 %v2351_v3, 16  ;;  %v1496_v17 = vshll.u32 %v2351_v3, 16  ;;  %v1579_v22 = vunpack.c.l.b16 %v1477_v6  ;;  %v995_v40 = vsel %vm2685_vm4, %v990_v25, %v994_v26  ;;  %v2394_v3 = vld [vmem:[%s2647_s10 + $0x18] sm:$0xe]  ;;  %v2353_v4 = vld [vmem:[%s2647_s10 + $0x30] sm:$0xf] }
  0x60   : > { %1268 = vmatpush.bf16.msra.mxu1 %v2494_v60  ;;  %1820 = vmatpush.bf16.msra.mxu0 %v3008_v27  ;;  %v3034_v60 = vld [vmem:[%s2647_s10 + $0x44] sm:$0x1]  ;;  %v1504_v48 = vrot.slane %v1502_v19, 5  ;;  %v2252_v53 = vrot.slane %v2244_v38, 9  ;;  %v1165_v54 = vrot.slane %v2899_v46, 5  ;;  %v1032_v44 = vunpack.c.l.b16 %v995_v40 }
  0x61   : > { %v1006_v14 = vshll.u32 %v3034_v60, 16  ;;  %v1495_v24 = vrot.slane %v1493_v16, 4  ;;  %v1498_v32 = vrot.slane %v1496_v17, 5  ;;  %2564 = vmatpush.bf16.msra.mxu2 %v3008_v27  ;;  %v1486_v27 = vrot.slane %v1485_v30, 4  ;;  %v2355_v6 = vld [vmem:[%s2647_s10 + $0x38] sm:$0xf] }
  0x62   : > { %v1166_v61 = vsel %vm2694_vm5, %v2252_v53, %v1165_v54  ;;  %v1705_v62 = vrot.slane %v2983_v5, 5  ;;  %v1507_v11 = vshrl.u32 %v2353_v4, 16  ;;  %v1510_v13 = vshll.u32 %v2353_v4, 16  ;;  %v2303_v17 = vld [vmem:[%s2647_s10 + $0x20] sm:$0xf] }
  0x63   : > { %v1008_v47 = vrot.slane %v1006_v14, 5  ;;  %v1499_v35 = vor.u32 %v1498_v32, %v1495_v24  ;;  %v1202_v0 = vunpack.c.l.b16 %v1166_v61  ;;  %v1491_v46 = vsel %vm2685_vm4, %v1486_v27, %v1490_v43  ;;  %v2245_v53 = vld [vmem:[%s2647_s10 + $0x28] sm:$0xe]  ;;  %v2246_v54 = vld [vmem:[%s2647_s10 + $0x30] sm:$0xe] }
  0x64   : > { %1269 = vmatpush.bf16.msra.mxu1 %v2493_v1  ;;  %1821 = vmatpush.bf16.msra.mxu0 %v2521_v15  ;;  %v1036_v1 = vpack.c.b16 %v1031_v59, %v1030_v58  ;;  %v1162_v59 = vsel %vm2694_vm5, %v2251_v50, %v1161_v52  ;;  %v1521_v5 = vshrl.u32 %v2355_v6, 16  ;;  %v1709_v16 = vrot.slane %v2986_v7, 5  ;;  %v2307_v50 = vld [vmem:[%s2647_s10 + $0x30] sm:$0xf]  ;;  %v2395_v4 = vld [vmem:[%s2647_s10 + $0x20] sm:$0xe] }
  0x65   : > { %v1009_v41 = vsel %vm2685_vm4, %v1004_v29, %v1008_v47  ;;  %2565 = vmatpush.bf16.msra.mxu2 %v2521_v15  ;;  %v1500_v51 = vrot.slane %v1499_v35, 4  ;;  %v2447_v15 = vld [vmem:[%s2647_s10 + $0x34] sm:$0xf0]  ;;  %v1201_v45 = vunpack.c.l.b16 %v1162_v59  ;;  %v1580_v20 = vunpack.c.l.b16 %v1491_v46  ;;  %v3091_v29 = vld [vmem:[%s2647_s10 + $0x34] sm:$0x1] }
  0x66   : > { %v1033_v58 = vunpack.c.l.b16 %v1009_v41  ;;  %v2064_v28 = vor.u32 %v2447_v15, %v2063_v55  ;;  %v1509_v24 = vrot.slane %v1507_v11, 4  ;;  %v1512_v32 = vrot.slane %v1510_v13, 5  ;;  %v3094_v47 = vld [vmem:[%s2647_s10 + $0x3c] sm:$0x1]  ;;  %v2357_v55 = vld [vmem:[%s2647_s10 + $0x40] sm:$0xf] }
  0x67   : > { %v1505_v2 = vsel %vm2685_vm4, %v1500_v51, %v1504_v48  ;;  %v3085_v9 = vpack.c.b16 %v1202_v0, %v1201_v45  ;;  %v1530_v35 = vshll.u32 %v3094_v47, 16  ;;  %v2254_v59 = vrot.slane %v2246_v54, 9  ;;  %v2359_v15 = vld [vmem:[%s2647_s10 + $0x48] sm:$0xf] }
  0x68   : > { %1270 = vmatpush.bf16.msra.mxu1 %v2492_v31  ;;  %v1586_v31 = vpack.c.b16 %v1579_v22, %v1578_v10  ;;  %1822 = vmatpush.bf16.msra.mxu0 %v2520_v34  ;;  %v1037_v14 = vpack.c.b16 %v1033_v58, %v1032_v44  ;;  %v1581_v21 = vunpack.c.l.b16 %v1505_v2  ;;  %v2401_v10 = vrot.slane %v2393_v63, 9  ;;  %v2396_v11 = vld [vmem:[%s2647_s10 + $0x28] sm:$0xe] }
  0x69   : > { %2566 = vmatpush.bf16.msra.mxu2 %v2520_v34  ;;  %v2402_v22 = vrot.slane %v2394_v3, 9  ;;  %v1513_v19 = vor.u32 %v1512_v32, %v1509_v24  ;;  %v1532_v43 = vrot.slane %v1530_v35, 5  ;;  %v2253_v44 = vrot.slane %v2245_v53, 9 }
  0x6a   : > { %v1587_v30 = vpack.c.b16 %v1581_v21, %v1580_v20  ;;  %v1706_v7 = vsel %vm2694_vm5, %v2401_v10, %v1705_v62  ;;  %v1169_v58 = vrot.slane %v2962_v33, 5  ;;  %v1173_v61 = vrot.slane %v2965_v39, 5  ;;  %v2502_v62 = vld [vmem:[%s2647_s10 + $0x34] sm:$0xf0] }
  0x6b   : > { %561 = vmatmul.bf16.gmra.mxu1 %v2060_v18  ;;  %1108 = vmatmul.bf16.gmra.mxu0 %v1036_v1  ;;  %v2501_v18 = vld [vmem:[%s2647_s10 + $0x24] sm:$0xf0]  ;;  %v1524_v1 = vshll.u32 %v2355_v6, 16  ;;  %v1710_v56 = vsel %vm2694_vm5, %v2402_v22, %v1709_v16  ;;  %v1751_v37 = vunpack.c.l.b16 %v1706_v7  ;;  %v1514_v40 = vrot.slane %v1513_v19, 4  ;;  %v3121_v16 = vld [vmem:[%s2647_s10 + $0x44] sm:$0x1] }
  0x6c   : > { %v2304_v26 = vor.u32 %v2501_v18, %v2303_v17  ;;  %v1752_v38 = vunpack.c.l.b16 %v1710_v56  ;;  %v1535_v63 = vshrl.u32 %v2357_v55, 16  ;;  %v1538_v45 = vshll.u32 %v2357_v55, 16  ;;  %v3124_v17 = vld [vmem:[%s2647_s10 + $0x4c] sm:$0x1] }
  0x6d   : > { %1650 = vmatmul.bf16.vlgmr.msrb.gmra.mxu3 %v1586_v31  ;;  %v1526_v25 = vrot.slane %v1524_v1, 5  ;;  %v1516_v31 = vshll.u32 %v3091_v29, 16  ;;  %v1549_v0 = vshrl.u32 %v2359_v15, 16  ;;  %v1552_v46 = vshll.u32 %v2359_v15, 16 }
  0x6e   : > { %1405 = vmatmul.bf16.vlgmr.msrb.gmra.mxu2 %v2300_v36  ;;  %v1523_v36 = vrot.slane %v1521_v5, 4  ;;  %v1759_v48 = vpack.c.b16 %v1752_v38, %v1751_v37  ;;  %v1170_v6 = vsel %vm2694_vm5, %v2253_v44, %v1169_v58  ;;  %v1174_v33 = vsel %vm2694_vm5, %v2254_v59, %v1173_v61  ;;  %v2247_v38 = vld [vmem:[%s2647_s10 + $0x38] sm:$0xe] }
  0x6f   : > { %v1518_v41 = vrot.slane %v1516_v31, 5  ;;  %v1203_v13 = vunpack.c.l.b16 %v1170_v6  ;;  %v1204_v39 = vunpack.c.l.b16 %v1174_v33  ;;  %v1537_v5 = vrot.slane %v1535_v63, 4  ;;  %v2398_v61 = vld [vmem:[%s2647_s10 + $0x38] sm:$0xe]  ;;  %v2400_v63 = vld [vmem:[%s2647_s10 + $0x48] sm:$0xe] }
  0x70   : > { %v1527_v34 = vor.u32 %v1526_v25, %v1523_v36  ;;  %v1551_v18 = vrot.slane %v1549_v0, 4  ;;  %v1554_v1 = vrot.slane %v1552_v46, 5  ;;  %v2403_v20 = vrot.slane %v2395_v4, 9 }
  0x71   : > { %v1519_v51 = vsel %vm2685_vm4, %v1514_v40, %v1518_v41  ;;  %v3126_v21 = vpack.c.b16 %v1204_v39, %v1203_v13  ;;  %v1713_v22 = vrot.slane %v3051_v12, 5  ;;  %v2404_v24 = vrot.slane %v2396_v11, 9  ;;  %v2248_v40 = vld [vmem:[%s2647_s10 + $0x40] sm:$0xe] }
  0x72   : > { %v1528_v27 = vrot.slane %v1527_v34, 4  ;;  %v1582_v2 = vunpack.c.l.b16 %v1519_v51  ;;  %v1717_v32 = vrot.slane %v3054_v23, 5  ;;  %v1544_v25 = vshll.u32 %v3121_v16, 16  ;;  %v2503_v51 = vld [vmem:[%s2647_s10 + $0x44] sm:$0xf0] }
  0x73   : > { %v1714_v7 = vsel %vm2694_vm5, %v2403_v20, %v1713_v22  ;;  %v2255_v41 = vrot.slane %v2247_v38, 9  ;;  %v1721_v0 = vrot.slane %v3091_v29, 5  ;;  %v2406_v46 = vrot.slane %v2398_v61, 9 }
  0x74   : > { %v1533_v52 = vsel %vm2685_vm4, %v1528_v27, %v1532_v43  ;;  %v1718_v12 = vsel %vm2694_vm5, %v2404_v24, %v1717_v32  ;;  %v1546_v23 = vrot.slane %v1544_v25, 5  ;;  %v1753_v31 = vunpack.c.l.b16 %v1714_v7 }
  0x75   : > { %v1583_v3 = vunpack.c.l.b16 %v1533_v52  ;;  %v1754_v34 = vunpack.c.l.b16 %v1718_v12  ;;  %v1177_v27 = vrot.slane %v3021_v42, 5  ;;  %v2256_v43 = vrot.slane %v2248_v40, 9  ;;  %v2397_v42 = vld [vmem:[%s2647_s10 + $0x30] sm:$0xe] }
  0x76   : > { %v1733_v4 = vrot.slane %v3124_v17, 5  ;;  %v2408_v33 = vrot.slane %v2400_v63, 9 }
  0x77   : > { %v1588_v10 = vpack.c.b16 %v1583_v3, %v1582_v2  ;;  %v1760_v52 = vpack.c.b16 %v1754_v34, %v1753_v31  ;;  %v1178_v53 = vsel %vm2694_vm5, %v2255_v41, %v1177_v27  ;;  %v1725_v2 = vrot.slane %v3094_v47, 5 }
  0x78   : > { %v1205_v44 = vunpack.c.l.b16 %v1178_v53  ;;  %v1729_v3 = vrot.slane %v3121_v16, 5  ;;  %v1734_v29 = vsel %vm2694_vm5, %v2408_v33, %v1733_v4 }
  0x7b   : > { %566 = vmatmul.bf16.gmra.mxu1 %v2064_v28  ;;  %1113 = vmatmul.bf16.gmra.mxu0 %v1037_v14  ;;  %v1540_v28 = vrot.slane %v1538_v45, 5  ;;  %v2308_v14 = vor.u32 %v2502_v62, %v2307_v50  ;;  %v2311_v50 = vld [vmem:[%s2647_s10 + $0x40] sm:$0xf]  ;;  %v2405_v45 = vrot.slane %v2397_v42, 9 }
  0x7c   : > { %v2312_v59 = vor.u32 %v2503_v51, %v2311_v50  ;;  %v2399_v62 = vld [vmem:[%s2647_s10 + $0x40] sm:$0xe]  ;;  %s2443_s10 = sshll.u32 %s3236_s16, 5 }
  0x7d   : > { %1655 = vmatmul.bf16.gmra.mxu3 %v1587_v30  ;;  %v1541_v36 = vor.u32 %v1540_v28, %v1537_v5  ;;  %v1558_v30 = vshll.u32 %v3124_v17, 16  ;;  %v2407_v6 = vrot.slane %v2399_v62, 9  ;;  %v1722_v11 = vsel %vm2694_vm5, %v2405_v45, %v1721_v0  ;;  %s3198_s28 = scalar_lea.vmem %s3228_s2, %s2443_s10 }
  0x7e   : > { %1410 = vmatmul.bf16.gmra.mxu2 %v2304_v26  ;;  %v1555_v26 = vor.u32 %v1554_v1, %v1551_v18  ;;  %v1755_v47 = vunpack.c.l.b16 %v1722_v11  ;;  %v1758_v28 = vunpack.c.l.b16 %v1734_v29 }
  0x7f   : > { %v1560_v19 = vrot.slane %v1558_v30, 5  ;;  %v1730_v13 = vsel %vm2694_vm5, %v2407_v6, %v1729_v3 }
  0x80   : > { %v1556_v56 = vrot.slane %v1555_v26, 4  ;;  %v1757_v5 = vunpack.c.l.b16 %v1730_v13 }
  0x82   : > { %v1561_v37 = vsel %vm2685_vm4, %v1556_v56, %v1560_v19  ;;  %v1762_v18 = vpack.c.b16 %v1758_v28, %v1757_v5 }
  0x83   : > { %v1585_v55 = vunpack.c.l.b16 %v1561_v37 }
  0x8b   : > { %1271 = vmatmul.bf16.vlgmr.msra.gmra.mxu1 %v3045_v8  ;;  %1823 = vmatmul.bf16.vlgmr.msra.gmra.mxu0 %v1759_v48  ;;  %v1542_v8 = vrot.slane %v1541_v36, 4  ;;  %v1181_v48 = vrot.slane %v3034_v60, 5 }
  0x8d   : > { %1660 = vmatmul.bf16.gmra.mxu3 %v1588_v10  ;;  %v1547_v35 = vsel %vm2685_vm4, %v1542_v8, %v1546_v23  ;;  %v1182_v49 = vsel %vm2694_vm5, %v2256_v43, %v1181_v48 }
  0x8e   : > { %1415 = vmatmul.bf16.gmra.mxu2 %v2308_v14  ;;  %v1584_v54 = vunpack.c.l.b16 %v1547_v35  ;;  %v1206_v58 = vunpack.c.l.b16 %v1182_v49 }
  0x90   : > { %v1210_v15 = vpack.c.b16 %v1206_v58, %v1205_v44  ;;  %v1589_v60 = vpack.c.b16 %v1585_v55, %v1584_v54 }
  0x9b   : > { %1276 = vmatmul.bf16.gmra.mxu1 %v3085_v9  ;;  %1828 = vmatmul.bf16.gmra.mxu0 %v1760_v52  ;;  %v1726_v9 = vsel %vm2694_vm5, %v2406_v46, %v1725_v2 }
  0x9c   : > { %v1756_v39 = vunpack.c.l.b16 %v1726_v9 }
  0x9d   : > { %1665 = vmatmul.bf16.gmra.mxu3 %v1589_v60 }
  0x9e   : > { %1420 = vmatmul.bf16.gmra.mxu2 %v2312_v59  ;;  %v1761_v14 = vpack.c.b16 %v1756_v39, %v1755_v47 }
  0xa8   : > { %v461_v16 = vpop.f32.mrf.mxu1  ;;  %v451_v17 = vpop.f32.mrf.mxu0 }
  0xab   : > { %1281 = vmatmul.bf16.gmra.mxu1 %v3126_v21  ;;  %1833 = vmatmul.bf16.gmra.mxu0 %v1761_v14 }
  0xae   : > { %1838 = vmatmul.bf16.vlgmr.msra.gmra.mxu2 %v1762_v18 }
  0xb0   : > { %v463_v20 = vpop.f32.mrf.mxu1  ;;  %v453_v10 = vpop.f32.mrf.mxu0 }
  0xb1   : > { %v720_v1 = vpop.f32.mrf.mxu2  ;;  %v854_v22 = vpop.f32.mrf.mxu3 }
  0xb8   : > { %v466_v32 = vpop.f32.mrf.mxu1  ;;  %v456_v57 = vpop.f32.mrf.mxu0 }
  0xb9   : > { %v722_v24 = vpop.f32.mrf.mxu2  ;;  %v3169_v36 = vpop.f32.mrf.mxu3 }
  0xbb   : > { %1286 = vmatmul.bf16.gmra.mxu1 %v1210_v15 }
  0xc0   : > { %v468_v26 = vpop.f32.mrf.mxu1  ;;  %v458_v30 = vpop.f32.mrf.mxu0 }
  0xc1   : > { %v725_v25 = vpop.f32.mrf.mxu2  ;;  %v859_v7 = vpop.f32.mrf.mxu3 }
  0xc8   : > { %v552_v8 = vpop.f32.mrf.mxu1  ;;  %v1099_v23 = vpop.f32.mrf.mxu0 }
  0xc9   : > { %v727_v12 = vpop.f32.mrf.mxu2  ;;  %v553_v21 = vadd.f32 %v552_v8, %v451_v17  ;;  %v3171_v19 = vpop.f32.mrf.mxu3 }
  0xcb   : > { %v740_v56 = vadd.f32 %v720_v1, %v553_v21 }
  0xcd   : > { %v874_v31 = vadd.f32 %v854_v22, %v740_v56 }
  0xcf   : > { %v1119_v34 = vadd.f32 %v1099_v23, %v874_v31 }
  0xd0   : > { %v554_v37 = vpop.f32.mrf.mxu1  ;;  %v1101_v38 = vpop.f32.mrf.mxu0 }
  0xd1   : > { %v730_v35 = vpop.f32.mrf.mxu2  ;;  %v555_v40 = vadd.f32 %v554_v37, %v453_v10  ;;  %v864_v27 = vpop.f32.mrf.mxu3 }
  0xd3   : > { %v741_v41 = vadd.f32 %v722_v24, %v555_v40 }
  0xd8   : > { %v557_v48 = vpop.f32.mrf.mxu1  ;;  %v1104_v50 = vpop.f32.mrf.mxu0 }
  0xd9   : > { %v732_v43 = vpop.f32.mrf.mxu2  ;;  %v558_v51 = vadd.f32 %v557_v48, %v456_v57  ;;  %v3173_v55 = vpop.f32.mrf.mxu3  ;;  %v875_v57 = vadd.f32 %v3169_v36, %v741_v41 }
  0xdb   : > { %v742_v52 = vadd.f32 %v725_v25, %v558_v51 }
  0xdd   : > { %v876_v53 = vadd.f32 %v859_v7, %v742_v52 }
  0xdf   : > { %v1121_v49 = vadd.f32 %v1104_v50, %v876_v53 }
  0xe0   : > { %v559_v44 = vpop.f32.mrf.mxu1  ;;  %v1106_v58 = vpop.f32.mrf.mxu0 }
  0xe1   : > { %v735_v54 = vpop.f32.mrf.mxu2  ;;  %v560_v59 = vadd.f32 %v559_v44, %v458_v30  ;;  %v3175_v60 = vpop.f32.mrf.mxu3 }
  0xe3   : > { %v743_v42 = vadd.f32 %v727_v12, %v560_v59 }
  0xe8   : > { %v562_v15 = vpop.f32.mrf.mxu1  ;;  %v1109_v62 = vpop.f32.mrf.mxu0 }
  0xe9   : > { %v737_v61 = vpop.f32.mrf.mxu2  ;;  %v563_v63 = vadd.f32 %v562_v15, %v461_v16  ;;  %v3183_v11 = vpop.f32.mrf.mxu3 }
  0xeb   : > { %v744_v45 = vadd.f32 %v730_v35, %v563_v63 }
  0xed   : > { %v878_v0 = vadd.f32 %v864_v27, %v744_v45 }
  0xef   : > { %v3177_v46 = vadd.f32 %v1109_v62, %v878_v0 }
  0xf0   : > { %v564_v3 = vpop.f32.mrf.mxu1  ;;  %v3179_v4 = vpop.f32.mrf.mxu0 }
  0xf1   : > { %v1406_v2 = vpop.f32.mrf.mxu2  ;;  %v565_v6 = vadd.f32 %v564_v3, %v463_v20  ;;  %v1651_v5 = vpop.f32.mrf.mxu3 }
  0xf3   : > { %v3181_v33 = vadd.f32 %v732_v43, %v565_v6  ;;  %v877_v43 = vadd.f32 %v3171_v19, %v743_v42 }
  0xf8   : > { %v567_v13 = vpop.f32.mrf.mxu1  ;;  %v3185_v29 = vpop.f32.mrf.mxu0 }
  0xf9   : > { %v1408_v9 = vpop.f32.mrf.mxu2  ;;  %v568_v47 = vadd.f32 %v567_v13, %v466_v32  ;;  %v1653_v1 = vpop.f32.mrf.mxu3  ;;  %v1120_v32 = vadd.f32 %v1101_v38, %v875_v57 }
  0xfb   : > { %v3187_v39 = vadd.f32 %v735_v54, %v568_v47  ;;  %v1122_v54 = vadd.f32 %v1106_v58, %v877_v43 }
 0x100   : > { %v569_v14 = vpop.f32.mrf.mxu1  ;;  %v3189_v16 = vpop.f32.mrf.mxu0 }
 0x101   : > { %v1411_v28 = vpop.f32.mrf.mxu2  ;;  %v570_v17 = vadd.f32 %v569_v14, %v468_v26  ;;  %v1656_v23 = vpop.f32.mrf.mxu3 }
 0x103   : > { %v3191_v18 = vadd.f32 %v737_v61, %v570_v17 }
 0x108   : > { %v1272_v20 = vpop.f32.mrf.mxu1  ;;  %v1824_v10 = vpop.f32.mrf.mxu0 }
 0x109   : > { %v1292_v22 = vadd.f32 %v1272_v20, %v1119_v34  ;;  %v1413_v24 = vpop.f32.mrf.mxu2  ;;  %v1658_v51 = vpop.f32.mrf.mxu3 }
 0x10b   : > { %v1426_v25 = vadd.f32 %v1406_v2, %v1292_v22 }
 0x10d   : > { %v1671_v30 = vadd.f32 %v1651_v5, %v1426_v25  ;;  %v879_v5 = vadd.f32 %v3173_v55, %v3181_v33 }
 0x10f   : > { %v1844_v56 = vadd.f32 %v1824_v10, %v1671_v30 }
 0x110   : > { %v1274_v7 = vpop.f32.mrf.mxu1  ;;  %v1826_v12 = vpop.f32.mrf.mxu0 }
 0x111   : > { %v1293_v8 = vadd.f32 %v1274_v7, %v1120_v32  ;;  %v1416_v26 = vpop.f32.mrf.mxu2  ;;  %v1882_v37 = vmul.f32 %v1844_v56, %v1844_v56 }
 0x113   : > { %v1427_v21 = vadd.f32 %v1408_v9, %v1293_v8 }
 0x115   : > { %v1672_v31 = vadd.f32 %v1653_v1, %v1427_v21  ;;  %v1124_v1 = vadd.f32 %v3179_v4, %v879_v5 }
 0x117   : > { %v1845_v35 = vadd.f32 %v1826_v12, %v1672_v31 }
 0x118   : > { %v1277_v36 = vpop.f32.mrf.mxu1  ;;  %v1829_v34 = vpop.f32.mrf.mxu0 }
 0x119   : > { %v2531_v38 = vpack.c.bf16 %v1845_v35, %v1844_v56  ;;  %v1868_v40 = vadd.f32 %v1845_v35, %v1844_v56  ;;  %v1883_v41 = vmul.f32 %v1845_v35, %v1845_v35  ;;  %v1294_v27 = vadd.f32 %v1277_v36, %v1121_v49  ;;  %v1418_v53 = vpop.f32.mrf.mxu2  ;;  %v1661_v49 = vpop.f32.mrf.mxu3 }
 0x11a   : > { %v881_v35 = vadd.f32 %v3183_v11, %v3191_v18 }
 0x11b   : > { %2532 = vst [vmem:[%s3198_s28] sm:$0xff] %v2531_v38   ;;  %v1890_v48 = vadd.f32 %v1883_v41, %v1882_v37  ;;  %v1428_v50 = vadd.f32 %v1411_v28, %v1294_v27 }
 0x11d   : > { %v1673_v52 = vadd.f32 %v1656_v23, %v1428_v50 }
 0x11f   : > { %v1846_v44 = vadd.f32 %v1829_v34, %v1673_v52  ;;  %v1126_v34 = vadd.f32 %v3189_v16, %v881_v35 }
 0x120   : > { %v1279_v59 = vpop.f32.mrf.mxu1  ;;  %v1831_v61 = vpop.f32.mrf.mxu0 }
 0x121   : > { %v1869_v15 = vadd.f32 %v1868_v40, %v1846_v44  ;;  %v1884_v62 = vmul.f32 %v1846_v44, %v1846_v44  ;;  %v1295_v63 = vadd.f32 %v1279_v59, %v1122_v54  ;;  %v1421_v19 = vpop.f32.mrf.mxu2  ;;  %v1663_v10 = vpop.f32.mrf.mxu3 }
 0x123   : > { %v1891_v45 = vadd.f32 %v1890_v48, %v1884_v62  ;;  %v1429_v0 = vadd.f32 %v1413_v24, %v1295_v63 }
 0x125   : > { %v1674_v2 = vadd.f32 %v1658_v51, %v1429_v0 }
 0x127   : > { %v1847_v3 = vadd.f32 %v1831_v61, %v1674_v2 }
 0x128   : > { %v1282_v42 = vpop.f32.mrf.mxu1  ;;  %v1834_v58 = vpop.f32.mrf.mxu0 }
 0x129   : > { %v2536_v6 = vpack.c.bf16 %v1847_v3, %v1846_v44  ;;  %v1870_v9 = vadd.f32 %v1869_v15, %v1847_v3  ;;  %v1885_v13 = vmul.f32 %v1847_v3, %v1847_v3  ;;  %v1296_v47 = vadd.f32 %v1282_v42, %v3177_v46  ;;  %v1423_v32 = vpop.f32.mrf.mxu2  ;;  %v1666_v31 = vpop.f32.mrf.mxu3 }
 0x12a   : > { %v880_v46 = vadd.f32 %v3175_v60, %v3187_v39 }
 0x12b   : > { %2548 = vst [vmem:[%s3198_s28 + $0x8] sm:$0xff] %v2536_v6   ;;  %v1892_v28 = vadd.f32 %v1891_v45, %v1885_v13  ;;  %v1430_v14 = vadd.f32 %v1416_v26, %v1296_v47 }
 0x12c   : > { %v1125_v12 = vadd.f32 %v3185_v29, %v880_v46 }
 0x12d   : > { %v1675_v17 = vadd.f32 %v1661_v49, %v1430_v14 }
 0x12f   : > { %v1848_v20 = vadd.f32 %v1834_v58, %v1675_v17 }
 0x130   : > { %v1284_v22 = vpop.f32.mrf.mxu1  ;;  %v1836_v55 = vpop.f32.mrf.mxu0 }
 0x131   : > { %v1871_v24 = vadd.f32 %v1870_v9, %v1848_v20  ;;  %v1886_v57 = vmul.f32 %v1848_v20, %v1848_v20  ;;  %v1297_v25 = vadd.f32 %v1284_v22, %v1124_v1  ;;  %v1839_v60 = vpop.f32.mrf.mxu2  ;;  %v1668_v50 = vpop.f32.mrf.mxu3 }
 0x133   : > { %v1893_v30 = vadd.f32 %v1892_v28, %v1886_v57  ;;  %v1431_v7 = vadd.f32 %v1418_v53, %v1297_v25 }
 0x135   : > { %v1676_v33 = vadd.f32 %v1663_v10, %v1431_v7 }
 0x137   : > { %v1849_v8 = vadd.f32 %v1836_v55, %v1676_v33 }
 0x138   : > { %v1287_v23 = vpop.f32.mrf.mxu1 }
 0x139   : > { %v2541_v4 = vpack.c.bf16 %v1849_v8, %v1848_v20  ;;  %v1872_v21 = vadd.f32 %v1871_v24, %v1849_v8  ;;  %v1887_v56 = vmul.f32 %v1849_v8, %v1849_v8  ;;  %v1298_v26 = vadd.f32 %v1287_v23, %v1125_v12  ;;  %v1841_v52 = vpop.f32.mrf.mxu2 }
 0x13b   : > { %2549 = vst [vmem:[%s3198_s28 + $0x10] sm:$0xff] %v2541_v4   ;;  %v1894_v37 = vadd.f32 %v1893_v30, %v1887_v56  ;;  %v1432_v36 = vadd.f32 %v1421_v19, %v1298_v26 }
 0x13d   : > { %v1677_v39 = vadd.f32 %v1666_v31, %v1432_v36 }
 0x13f   : > { %v1850_v38 = vadd.f32 %v1839_v60, %v1677_v39 }
 0x140   : > { %v1289_v29 = vpop.f32.mrf.mxu1 }
 0x141   : > { %v1873_v40 = vadd.f32 %v1872_v21, %v1850_v38  ;;  %v1888_v41 = vmul.f32 %v1850_v38, %v1850_v38  ;;  %v1299_v27 = vadd.f32 %v1289_v29, %v1126_v34 }
 0x143   : > { %v1895_v43 = vadd.f32 %v1894_v37, %v1888_v41  ;;  %v1433_v48 = vadd.f32 %v1423_v32, %v1299_v27 }
 0x145   : > { %v1678_v51 = vadd.f32 %v1668_v50, %v1433_v48 }
 0x147   : > { %v1851_v11 = vadd.f32 %v1841_v52, %v1678_v51 }
 0x149   : > { %v2546_v18 = vpack.c.bf16 %v1851_v11, %v1850_v38  ;;  %v1874_v53 = vadd.f32 %v1873_v40, %v1851_v11  ;;  %v1889_v54 = vmul.f32 %v1851_v11, %v1851_v11 }
 0x14b   : > { %2550 = vst [vmem:[%s3198_s28 + $0x18] sm:$0xff] %v2546_v18   ;;  %v1875_v44 = vrot.slane %v1874_v53, 4  ;;  %v1896_v59 = vadd.f32 %v1895_v43, %v1889_v54 }
 0x14d   : > { %v1876_v16 = vadd.f32 %v1875_v44, %v1874_v53  ;;  %v1897_v61 = vrot.slane %v1896_v59, 4 }
 0x14f   : > { %v1877_v15 = vrot.slane %v1876_v16, 2  ;;  %v1898_v62 = vadd.f32 %v1897_v61, %v1896_v59 }
 0x151   : > { %v1878_v63 = vadd.f32 %v1877_v15, %v1876_v16  ;;  %v1899_v45 = vrot.slane %v1898_v62, 2 }
 0x153   : > { %v1879_v0 = vrot.slane %v1878_v63, 1  ;;  %v1900_v2 = vadd.f32 %v1899_v45, %v1898_v62 }
 0x155   : > { %v1880_v49 = vadd.f32 %v1879_v0, %v1878_v63  ;;  %v1901_v3 = vrot.slane %v1900_v2, 1 }
 0x157   : > { %1881 = vst [vmem:[%s211_s5] sm:$0x1] %v1880_v49  ;;  %v1902_v19 = vadd.f32 %v1901_v3, %v1900_v2 }
 0x159   : > { %1903 = vst [vmem:[%s214_s8] sm:$0x1] %v1902_v19 }
 0x15a PF: > { %s15_s15 = sadd.s32 1, %s2582_s15  }
 0x15b   : > { %p12_p4 = scmp.ge.s32.totalorder %s15_s15, 4  }
 0x15d   :  { %14 = sbr.rel (!%p12_p4) target bundleno = 1 (0x1), region = 84 }

</bundles_post_ra>
